<compile_context>
chip_gen: v7x
topology: tpu7x:2x2x1
jax: 0.10.0
libtpu: 0.0.40
codegen_flags: <defaults>
</compile_context>

<pallas_src>
import functools

import numpy as np
import jax
import jax.numpy as jnp
from jax.experimental import pallas as pl
from jax.experimental.pallas import tpu as pltpu

# ----------------------------- configuration --------------------------------
BLOCKS = 1
LAYERS = 3                       # dilations 1, 2, 4
KERNEL_SIZE = 2                  # even -> PyTorch uses kernel_size+1 with 'same'
RESIDUAL_CHANNELS = 16
SKIP_CHANNELS = 16
COND_CHANNELS = 8                # cfg.trainer.latent_d
CLASSES = 64
CHANNELS_IN = 1
# TODO(synk): SyncBatchNorm path not implemented; config uses batch_norm_active=False.

K_EFF = KERNEL_SIZE + 1 if KERNEL_SIZE % 2 == 0 else KERNEL_SIZE
DILATIONS = tuple(2 ** i for _ in range(BLOCKS) for i in range(LAYERS))
NUM_LAYERS = BLOCKS * LAYERS
# receptive-field half width: first conv pad (=1) + per-layer pads (=dilation)
HALO = ((K_EFF - 1) // 2) * (1 + sum(DILATIONS))          # = 8


def _round_up(v, m):
    return ((v + m - 1) // m) * m


def _tshift(a, s):
    """a[..., p] -> a[..., p + s] with lane wrap-around.

    Wrapped lanes only land in the halo region that is never consumed by the
    central output, so no edge masking is needed.  jnp.roll (static shift)
    lowers to a lane slice + concat; pltpu.roll is the single-XLU-op variant.
    """
    if s == 0:
        return a
    return jnp.roll(a, -s, axis=-1)


# ------------------------------- kernel --------------------------------------
def wavenet_decoder_kernel(
    x_ref, c_ref,
    w_first_ref, b_first_ref,      # (R, K) f32        / (R, 1) f32
    w_skip_ref, b_skip_ref,        # (S, R) mm-dtype   / (S, 1) f32
    w_cond_ref,                    # (L*2R + S, C) mm-dtype (all cond 1x1s fused)
    w_tap_ref, b_tap_ref,          # (L, 2R, K*R) mm   / (L, 2R, 1) f32 (conv+cond bias)
    w_rs_ref, b_rs_ref,            # (L, R+S, R) mm    / (L, R+S, 1) f32
    w_fc_skip_ref, w_fc_res_ref, b_fc_ref,   # (S, S) mm x2 / (S, 1) f32 (fc+cond bias)
    w_out_ref, b_out_ref,          # (CLASSES, S) mm   / (CLASSES, 1) f32
    out_ref,
    *, seq_len, t_blk, halo, dilations, res, mm_dtype):
    t_ext = t_blk + 2 * halo
    two_r = 2 * res

    x = x_ref[0, 0]                # (1, T_ext)  f32, time on lanes
    c = c_ref[0, 0]                # (C, T_ext)  f32

    # validity mask: 1.0 where the window position maps to a real sample in
    # [0, seq_len).  Multiplying the residual by it before each dilated conv
    # reproduces PyTorch's per-layer 'same' zero padding at the true signal
    # boundaries (and neutralises the zero-padded tail of the last block).
    tb = pl.program_id(1)
    pos = jax.lax.broadcasted_iota(jnp.int32, (1, t_ext), 1)
    gpos = pos + (tb * t_blk - halo)
    maskf = ((gpos >= 0) & (gpos < seq_len)).astype(jnp.float32)

    def mm(w, a):
        # channel-first 1x1 conv / fused conv == W(co, ci) @ act(ci, T) on MXU,
        # bf16 operands, f32 accumulation.
        return jnp.dot(w, a.astype(mm_dtype), preferred_element_type=jnp.float32)

    # ---- first conv (C_in = 1, 3 taps): cheap VPU broadcast-FMAs -------------
    wf = w_first_ref[...]          # (R, 3)
    residual = (wf[:, 0:1] * _tshift(x, -1)
                + wf[:, 1:2] * x
                + wf[:, 2:3] * _tshift(x, 1)
                + b_first_ref[...])                        # (R, T_ext) f32
    skip = mm(w_skip_ref[...], residual) + b_skip_ref[...]  # (S, T_ext)

    # ---- all conditioning 1x1 convs (3 layers + tail) in ONE matmul ----------
    cond_all = mm(w_cond_ref[...], c)                      # (L*2R + S, T_ext)

    # ---- wavenet layers (static unroll, static dilations) --------------------
    for li, d in enumerate(dilations):
        rm = residual * maskf                              # zero outside [0, T)
        # fused 3-tap dilated conv: stack the shifted taps on sublanes
        taps = jnp.concatenate([_tshift(rm, -d), rm, _tshift(rm, d)], axis=0)
        h = mm(w_tap_ref[li], taps)                        # (2R, T_ext)
        h = h + cond_all[li * two_r:(li + 1) * two_r] + b_tap_ref[li]
        gate = jax.nn.sigmoid(h[:res]) * jnp.tanh(h[res:])  # 'original' gate (EUP)
        rs = mm(w_rs_ref[li], gate) + b_rs_ref[li]         # fused residual+skip 1x1
        residual = residual + rs[:res]
        skip = skip + rs[res:]

    # ---- tail: skip+=residual; relu; fc (split halves: no channel concat);
    #      + conditioning; relu; logits ----------------------------------------
    skip = skip + residual
    h = (mm(w_fc_skip_ref[...], jnp.maximum(skip, 0.0))
         + mm(w_fc_res_ref[...], jnp.maximum(residual, 0.0))
         + cond_all[len(dilations) * two_r:]
         + b_fc_ref[...])
    h = jnp.maximum(h, 0.0)
    logits = mm(w_out_ref[...], h) + b_out_ref[...]        # (CLASSES, T_ext)
    # lane-dense store of the central T_blk samples only
    out_ref[0, 0] = logits[:, halo:halo + t_blk]


# --------------------------- weight re-layout --------------------------------
def _pack_params(params, mm_dtype):
    R, S, K, L = RESIDUAL_CHANNELS, SKIP_CHANNELS, K_EFF, NUM_LAYERS
    f32 = jnp.float32
    w_first = params['fw'][:, 0, :].T.astype(f32)                       # (R, K)
    b_first = params['fb'].T.astype(f32)                                 # (R, 1)
    w_skip = params['sw'].T.astype(mm_dtype)                             # (S, R)
    b_skip = params['sb'].T.astype(f32)
    # conditioning 1x1s for every layer + the tail, fused row-wise
    w_cond = jnp.concatenate(
        [params['lkw'][l].T for l in range(L)] + [params['cw'].T],
        axis=0).astype(mm_dtype)                                          # (L*2R+S, C)
    # per-layer fused dilated-conv taps: rows = co, cols = k*R + ci
    w_tap = jnp.stack(
        [jnp.transpose(params['lcw'][l], (2, 0, 1)).reshape(2 * R, K * R)
         for l in range(L)]).astype(mm_dtype)                             # (L, 2R, K*R)
    b_tap = jnp.stack(
        [(params['lcb'][l] + params['lkb'][l]).T for l in range(L)]).astype(f32)
    # per-layer fused residual+skip 1x1
    w_rs = jnp.stack(
        [jnp.concatenate([params['lrw'][l].T, params['lsw'][l].T], axis=0)
         for l in range(L)]).astype(mm_dtype)                             # (L, R+S, R)
    b_rs = jnp.stack(
        [jnp.concatenate([params['lrb'][l].T, params['lsb'][l].T], axis=0)
         for l in range(L)]).astype(f32)                                  # (L, R+S, 1)
    # tail fc split into the skip / residual halves of the original concat
    w_fc_skip = params['fcw'][:S].T.astype(mm_dtype)                      # (S, S)
    w_fc_res = params['fcw'][S:].T.astype(mm_dtype)                       # (S, S)
    b_fc = (params['fcb'] + params['cb']).T.astype(f32)                   # (S, 1)
    w_out = params['lgw'].T.astype(mm_dtype)                              # (CLASSES, S)
    b_out = params['lgb'].T.astype(f32)                                   # (CLASSES, 1)
    return (w_first, b_first, w_skip, b_skip, w_cond, w_tap, b_tap,
            w_rs, b_rs, w_fc_skip, w_fc_res, b_fc, w_out, b_out)


# ------------------------------- wrapper --------------------------------------
def wavenet_decoder_forward(x, c, params, *, t_blk=None, mm_dtype=jnp.bfloat16):
    # x: (B, T) waveform (PyTorch unsqueezes to (B,1,T)); c: (B, cond, T_cond) NCT.
    x_nct = x[:, None, :] if x.ndim < 3 else x
    x_nct = x_nct.astype(jnp.float32)
    B, _, T = x_nct.shape
    # shift_input=False for this config; shift_right path not exercised.

    assert c is not None
    cb_, cc_, cl_ = c.shape
    assert cb_ == B
    if cl_ != 1:
        assert T % cl_ == 0
        c_up = jnp.repeat(c, T // cl_, axis=2)              # _upsample_cond
    else:
        c_up = jnp.broadcast_to(c, (cb_, cc_, T))
    c_up = c_up.astype(jnp.float32)

    if t_blk is None:
        # multiple of 128 (lane-dense stores); modest per-step VMEM (<~4 MiB)
        # so it fits the scoped defaults on v5e/v6e/v7x with headroom.
        t_blk = min(1024, _round_up(T, 128))
    nb = pl.cdiv(T, t_blk)
    t_pad = nb * t_blk
    t_ext = t_blk + 2 * HALO

    # Zero-pad the true signal boundaries + ragged tail, then cut overlapping
    # halo'd frames so the grid can use plain Blocked BlockSpecs.  The frames
    # overlap by 2*HALO=16 samples (<2% extra HBM traffic at t_blk>=1024).
    pad = ((0, 0), (0, 0), (HALO, HALO + t_pad - T))
    x_p = jnp.pad(x_nct, pad)
    c_p = jnp.pad(c_up, pad)
    idx = jnp.arange(nb)[:, None] * t_blk + jnp.arange(t_ext)[None, :]
    x_f = jnp.transpose(x_p[:, :, idx], (0, 2, 1, 3))       # (B, NB, 1, T_ext)
    c_f = jnp.transpose(c_p[:, :, idx], (0, 2, 1, 3))       # (B, NB, C, T_ext)

    weights = _pack_params(params, mm_dtype)
    args = (x_f, c_f) + weights

    def _full(a):
        # whole array resident in VMEM; constant index map => DMA'd once.
        return pl.BlockSpec(a.shape, lambda b, t, _nd=a.ndim: (0,) * _nd)

    kernel = functools.partial(
        wavenet_decoder_kernel, seq_len=T, t_blk=t_blk, halo=HALO,
        dilations=DILATIONS, res=RESIDUAL_CHANNELS, mm_dtype=mm_dtype)

    out_f = pl.pallas_call(
        kernel,
        out_shape=jax.ShapeDtypeStruct((B, nb, CLASSES, t_blk), jnp.float32),
        grid_spec=pltpu.PrefetchScalarGridSpec(
            num_scalar_prefetch=0,
            grid=(B, nb),
            in_specs=[
                pl.BlockSpec((1, 1, 1, t_ext), lambda b, t: (b, t, 0, 0)),
                pl.BlockSpec((1, 1, COND_CHANNELS, t_ext),
                             lambda b, t: (b, t, 0, 0)),
            ] + [_full(w) for w in weights],
            out_specs=pl.BlockSpec((1, 1, CLASSES, t_blk),
                                   lambda b, t: (b, t, 0, 0)),
        ),
        compiler_params=pltpu.CompilerParams(
            dimension_semantics=("parallel", "parallel"),
            vmem_limit_bytes=32 * 1024 * 1024),
    )(*args)

    # (B, NB, CLASSES, T_blk) -> (B, CLASSES, T), matches PyTorch NCT logits
    out = jnp.transpose(out_f, (0, 2, 1, 3)).reshape(B, CLASSES, nb * t_blk)
    return out[:, :, :T]


# ----------------------------- deterministic params --------------------------
def init_params(key):
    ks = jax.random.split(key, 18)
    R, S, C, K, L = RESIDUAL_CHANNELS, SKIP_CHANNELS, COND_CHANNELS, K_EFF, NUM_LAYERS

    def w(k, shape, fan_in):
        v = jax.random.normal(k, shape, jnp.float32) / np.sqrt(fan_in)
        # keep weights exactly bf16-representable so the bf16 MXU path can be
        # compared against the f32 reference with a reasonably tight tolerance
        return v.astype(jnp.bfloat16).astype(jnp.float32)

    def b(k, shape):
        return 0.1 * jax.random.normal(k, shape, jnp.float32)

    return dict(
        fw=w(ks[0], (K, CHANNELS_IN, R), K * CHANNELS_IN), fb=b(ks[1], (1, R)),
        sw=w(ks[2], (R, S), R),                            sb=b(ks[3], (1, S)),
        cw=w(ks[4], (C, S), C),                            cb=b(ks[5], (1, S)),
        fcw=w(ks[6], (2 * S, S), 2 * S),                   fcb=b(ks[7], (1, S)),
        lgw=w(ks[8], (S, CLASSES), S),                     lgb=b(ks[9], (1, CLASSES)),
        lcw=w(ks[10], (L, K, R, 2 * R), K * R),            lcb=b(ks[11], (L, 1, 2 * R)),
        lkw=w(ks[12], (L, C, 2 * R), C),                   lkb=b(ks[13], (L, 1, 2 * R)),
        lrw=w(ks[14], (L, R, R), R),                       lrb=b(ks[15], (L, 1, R)),
        lsw=w(ks[16], (L, R, S), R),                       lsb=b(ks[17], (L, 1, S)),
    )


# ----------------------------- pure-JAX reference -----------------------------
def reference_forward(x, c, params):
    if x.ndim < 3:
        x = x[:, None, :]
    x = x.astype(jnp.float32)
    B, _, T = x.shape
    cb_, cc_, cl_ = c.shape
    c_up = jnp.repeat(c, T // cl_, axis=2) if cl_ != 1 else jnp.broadcast_to(c, (cb_, cc_, T))
    xb = jnp.transpose(x, (0, 2, 1))
    cbt = jnp.transpose(c_up, (0, 2, 1)).astype(jnp.float32)

    def mm(a, w):
        return jnp.einsum('btc,cd->btd', a, w)

    def conv_same(a, w, bias, d):
        k_taps = w.shape[0]
        pad = d * (k_taps - 1) // 2
        ap = jnp.pad(a, ((0, 0), (pad, pad), (0, 0)))
        y = jnp.zeros((B, T, w.shape[2]), jnp.float32)
        for k in range(k_taps):
            y = y + mm(ap[:, k * d:k * d + T, :], w[k])
        return y + bias

    residual = conv_same(xb, params['fw'], params['fb'], 1)
    skip = mm(residual, params['sw']) + params['sb']
    for li, d in enumerate(DILATIONS):
        h = conv_same(residual, params['lcw'][li], params['lcb'][li], d)
        h = h + mm(cbt, params['lkw'][li]) + params['lkb'][li]
        g = jax.nn.sigmoid(h[..., :RESIDUAL_CHANNELS]) * jnp.tanh(h[..., RESIDUAL_CHANNELS:])
        residual = residual + mm(g, params['lrw'][li]) + params['lrb'][li]
        skip = skip + mm(g, params['lsw'][li]) + params['lsb'][li]
    skip = skip + residual
    cat = jax.nn.relu(jnp.concatenate([skip, residual], axis=-1))
    h = mm(cat, params['fcw']) + params['fcb']
    h = h + mm(cbt, params['cw']) + params['cb']
    h = jax.nn.relu(h)
    logits = mm(h, params['lgw']) + params['lgb']
    return jnp.transpose(logits, (0, 2, 1))


# ---------------------------------- main --------------------------------------
if __name__ == "__main__":
    key = jax.random.PRNGKey(0)
    pk, xk, ck, xk2, ck2 = jax.random.split(key, 5)
    params = init_params(pk)

    B, T, T_COND = 2, 16, 4
    x = jax.random.normal(xk, (B, T), jnp.float32)                       # waveform
    c = jax.random.normal(ck, (B, COND_CHANNELS, T_COND), jnp.float32)   # latent, NCT
    ref = reference_forward(x, c, params)

    # (1) f32 matmul path: structural correctness (halo/mask/fusion/layout).
    #     Tolerance 1e-2 (not 1e-3) only because TPU matmuls at DEFAULT
    #     precision may use reduced-precision passes in both kernel and ref.
    out_f32 = jax.block_until_ready(
        wavenet_decoder_forward(x, c, params, mm_dtype=jnp.float32))
    assert out_f32.shape == (B, CLASSES, T), out_f32.shape
    np.testing.assert_allclose(np.asarray(out_f32), np.asarray(ref),
                               rtol=1e-2, atol=1e-2)

    # (2) bf16 MXU path (production config): only activation rounding differs.
    out_bf16 = jax.block_until_ready(
        wavenet_decoder_forward(x, c, params, mm_dtype=jnp.bfloat16))
    np.testing.assert_allclose(np.asarray(out_bf16), np.asarray(ref),
                               rtol=5e-2, atol=5e-2)

    # (3) multi-block grid (3 time blocks x 2 batches): exercises the halo'd
    #     frames, boundary mask and block-edge stitching.
    T2, T_COND2 = 384, 48
    x2 = jax.random.normal(xk2, (B, T2), jnp.float32)
    c2 = jax.random.normal(ck2, (B, COND_CHANNELS, T_COND2), jnp.float32)
    ref2 = reference_forward(x2, c2, params)
    out2 = jax.block_until_ready(
        wavenet_decoder_forward(x2, c2, params, t_blk=128, mm_dtype=jnp.float32))
    assert out2.shape == (B, CLASSES, T2), out2.shape
    np.testing.assert_allclose(np.asarray(out2), np.asarray(ref2),
                               rtol=1e-2, atol=1e-2)

    print("KERNEL_OK")
</pallas_src>

<mosaic_0001>
module attributes {stable_mosaic.version = 11 : i64} {
  func.func @wavenet_decoder_kernel(%arg0: i32, %arg1: i32, %arg2: memref<1x1x1x144xf32, #tpu.memory_space<vmem>>, %arg3: memref<1x1x8x144xf32, #tpu.memory_space<vmem>>, %arg4: memref<16x3xf32, #tpu.memory_space<vmem>>, %arg5: memref<16x1xf32, #tpu.memory_space<vmem>>, %arg6: memref<16x16xf32, #tpu.memory_space<vmem>>, %arg7: memref<16x1xf32, #tpu.memory_space<vmem>>, %arg8: memref<112x8xf32, #tpu.memory_space<vmem>>, %arg9: memref<3x32x48xf32, #tpu.memory_space<vmem>>, %arg10: memref<3x32x1xf32, #tpu.memory_space<vmem>>, %arg11: memref<3x32x16xf32, #tpu.memory_space<vmem>>, %arg12: memref<3x32x1xf32, #tpu.memory_space<vmem>>, %arg13: memref<16x16xf32, #tpu.memory_space<vmem>>, %arg14: memref<16x16xf32, #tpu.memory_space<vmem>>, %arg15: memref<16x1xf32, #tpu.memory_space<vmem>>, %arg16: memref<64x16xf32, #tpu.memory_space<vmem>>, %arg17: memref<64x1xf32, #tpu.memory_space<vmem>>, %arg18: memref<1x1x64x128xf32, #tpu.memory_space<vmem>>) attributes {dimension_semantics = [#tpu.dimension_semantics<parallel>, #tpu.dimension_semantics<parallel>], iteration_bounds = array<i64: 2, 1>, scalar_prefetch = 0 : i64, scratch_operands = 0 : i64, tpu.core_type = #tpu.core_type<tc>, window_params = [{transform_indices = @transform_0, window_bounds = array<i64: 1, 1, 1, 144>}, {transform_indices = @transform_1, window_bounds = array<i64: 1, 1, 8, 144>}, {pipeline_mode = #tpu.pipeline_mode<synchronous>, transform_indices = @transform_2, window_bounds = array<i64: 16, 3>}, {pipeline_mode = #tpu.pipeline_mode<synchronous>, transform_indices = @transform_3, window_bounds = array<i64: 16, 1>}, {pipeline_mode = #tpu.pipeline_mode<synchronous>, transform_indices = @transform_4, window_bounds = array<i64: 16, 16>}, {pipeline_mode = #tpu.pipeline_mode<synchronous>, transform_indices = @transform_5, window_bounds = array<i64: 16, 1>}, {pipeline_mode = #tpu.pipeline_mode<synchronous>, transform_indices = @transform_6, window_bounds = array<i64: 112, 8>}, {pipeline_mode = #tpu.pipeline_mode<synchronous>, transform_indices = @transform_7, window_bounds = array<i64: 3, 32, 48>}, {pipeline_mode = #tpu.pipeline_mode<synchronous>, transform_indices = @transform_8, window_bounds = array<i64: 3, 32, 1>}, {pipeline_mode = #tpu.pipeline_mode<synchronous>, transform_indices = @transform_9, window_bounds = array<i64: 3, 32, 16>}, {pipeline_mode = #tpu.pipeline_mode<synchronous>, transform_indices = @transform_10, window_bounds = array<i64: 3, 32, 1>}, {pipeline_mode = #tpu.pipeline_mode<synchronous>, transform_indices = @transform_11, window_bounds = array<i64: 16, 16>}, {pipeline_mode = #tpu.pipeline_mode<synchronous>, transform_indices = @transform_12, window_bounds = array<i64: 16, 16>}, {pipeline_mode = #tpu.pipeline_mode<synchronous>, transform_indices = @transform_13, window_bounds = array<i64: 16, 1>}, {pipeline_mode = #tpu.pipeline_mode<synchronous>, transform_indices = @transform_14, window_bounds = array<i64: 64, 16>}, {pipeline_mode = #tpu.pipeline_mode<synchronous>, transform_indices = @transform_15, window_bounds = array<i64: 64, 1>}, {transform_indices = @transform_16, window_bounds = array<i64: 1, 1, 64, 128>}]} {
    %c0 = arith.constant 0 : index
    %c0_0 = arith.constant 0 : index
    %c0_1 = arith.constant 0 : index
    %c0_2 = arith.constant 0 : index
    %0 = vector.load %arg2[%c0, %c0_0, %c0_1, %c0_2] : memref<1x1x1x144xf32, #tpu.memory_space<vmem>>, vector<1x1x1x144xf32>
    %1 = vector.shape_cast %0 : vector<1x1x1x144xf32> to vector<1x144xf32>
    %c0_3 = arith.constant 0 : index
    %c0_4 = arith.constant 0 : index
    %c0_5 = arith.constant 0 : index
    %c0_6 = arith.constant 0 : index
    %2 = vector.load %arg3[%c0_3, %c0_4, %c0_5, %c0_6] : memref<1x1x8x144xf32, #tpu.memory_space<vmem>>, vector<1x1x8x144xf32>
    %3 = vector.shape_cast %2 : vector<1x1x8x144xf32> to vector<8x144xf32>
    %4 = tpu.iota {dimensions = array<i32: 1>} : vector<1x144xi32>
    %c128_i32 = arith.constant 128 : i32
    %5 = arith.muli %arg1, %c128_i32 : i32
    %c8_i32 = arith.constant 8 : i32
    %6 = arith.subi %5, %c8_i32 : i32
    %7 = vector.broadcast %6 : i32 to vector<1x144xi32>
    %8 = arith.addi %4, %7 : vector<1x144xi32>
    %c0_i32 = arith.constant 0 : i32
    %9 = vector.broadcast %c0_i32 : i32 to vector<1x144xi32>
    %10 = arith.cmpi sge, %8, %9 : vector<1x144xi32>
    %c16_i32 = arith.constant 16 : i32
    %11 = vector.broadcast %c16_i32 : i32 to vector<1x144xi32>
    %12 = arith.cmpi slt, %8, %11 : vector<1x144xi32>
    %13 = arith.andi %10, %12 : vector<1x144xi1>
    %14 = arith.extui %13 : vector<1x144xi1> to vector<1x144xi32>
    %15 = arith.sitofp %14 : vector<1x144xi32> to vector<1x144xf32>
    %c0_7 = arith.constant 0 : index
    %c0_8 = arith.constant 0 : index
    %16 = vector.load %arg4[%c0_7, %c0_8] : memref<16x3xf32, #tpu.memory_space<vmem>>, vector<16x3xf32>
    %17 = vector.extract_strided_slice %16 {offsets = [0, 0], sizes = [16, 1], strides = [1, 1]} : vector<16x3xf32> to vector<16x1xf32>
    %18 = vector.extract_strided_slice %1 {offsets = [0, 143], sizes = [1, 1], strides = [1, 1]} : vector<1x144xf32> to vector<1x1xf32>
    %19 = vector.extract_strided_slice %1 {offsets = [0, 0], sizes = [1, 143], strides = [1, 1]} : vector<1x144xf32> to vector<1x143xf32>
    %20 = tpu.concatenate %18, %19 in 1 : vector<1x1xf32>, vector<1x143xf32> -> vector<1x144xf32>
    %21 = vector.broadcast %17 : vector<16x1xf32> to vector<16x144xf32>
    %22 = vector.broadcast %20 : vector<1x144xf32> to vector<16x144xf32>
    %23 = arith.mulf %21, %22 : vector<16x144xf32>
    %24 = vector.extract_strided_slice %16 {offsets = [0, 1], sizes = [16, 1], strides = [1, 1]} : vector<16x3xf32> to vector<16x1xf32>
    %25 = vector.broadcast %24 : vector<16x1xf32> to vector<16x144xf32>
    %26 = vector.broadcast %1 : vector<1x144xf32> to vector<16x144xf32>
    %27 = arith.mulf %25, %26 : vector<16x144xf32>
    %28 = arith.addf %23, %27 : vector<16x144xf32>
    %29 = vector.extract_strided_slice %16 {offsets = [0, 2], sizes = [16, 1], strides = [1, 1]} : vector<16x3xf32> to vector<16x1xf32>
    %30 = vector.extract_strided_slice %1 {offsets = [0, 1], sizes = [1, 143], strides = [1, 1]} : vector<1x144xf32> to vector<1x143xf32>
    %31 = vector.extract_strided_slice %1 {offsets = [0, 0], sizes = [1, 1], strides = [1, 1]} : vector<1x144xf32> to vector<1x1xf32>
    %32 = tpu.concatenate %30, %31 in 1 : vector<1x143xf32>, vector<1x1xf32> -> vector<1x144xf32>
    %33 = vector.broadcast %29 : vector<16x1xf32> to vector<16x144xf32>
    %34 = vector.broadcast %32 : vector<1x144xf32> to vector<16x144xf32>
    %35 = arith.mulf %33, %34 : vector<16x144xf32>
    %36 = arith.addf %28, %35 : vector<16x144xf32>
    %c0_9 = arith.constant 0 : index
    %c0_10 = arith.constant 0 : index
    %37 = vector.load %arg5[%c0_9, %c0_10] : memref<16x1xf32, #tpu.memory_space<vmem>>, vector<16x1xf32>
    %38 = vector.broadcast %37 : vector<16x1xf32> to vector<16x144xf32>
    %39 = arith.addf %36, %38 : vector<16x144xf32>
    %c0_11 = arith.constant 0 : index
    %c0_12 = arith.constant 0 : index
    %40 = vector.load %arg6[%c0_11, %c0_12] : memref<16x16xf32, #tpu.memory_space<vmem>>, vector<16x16xf32>
    %cst = arith.constant dense<0.000000e+00> : vector<16x144xf32>
    %41 = tpu.matmul %40, %39, %cst {dimension_numbers = #tpu.dot_dimension_numbers<[1], [0], [0], [1], [0, 0, 1, 1], [], []>} : vector<16x16xf32>, vector<16x144xf32>, vector<16x144xf32> -> vector<16x144xf32>
    %c0_13 = arith.constant 0 : index
    %c0_14 = arith.constant 0 : index
    %42 = vector.load %arg7[%c0_13, %c0_14] : memref<16x1xf32, #tpu.memory_space<vmem>>, vector<16x1xf32>
    %43 = vector.broadcast %42 : vector<16x1xf32> to vector<16x144xf32>
    %44 = arith.addf %41, %43 : vector<16x144xf32>
    %c0_15 = arith.constant 0 : index
    %c0_16 = arith.constant 0 : index
    %45 = vector.load %arg8[%c0_15, %c0_16] : memref<112x8xf32, #tpu.memory_space<vmem>>, vector<112x8xf32>
    %cst_17 = arith.constant dense<0.000000e+00> : vector<112x144xf32>
    %46 = tpu.matmul %45, %3, %cst_17 {dimension_numbers = #tpu.dot_dimension_numbers<[1], [0], [0], [1], [0, 0, 1, 1], [], []>} : vector<112x8xf32>, vector<8x144xf32>, vector<112x144xf32> -> vector<112x144xf32>
    %47 = vector.broadcast %15 : vector<1x144xf32> to vector<16x144xf32>
    %48 = arith.mulf %39, %47 : vector<16x144xf32>
    %49 = vector.extract_strided_slice %48 {offsets = [0, 143], sizes = [16, 1], strides = [1, 1]} : vector<16x144xf32> to vector<16x1xf32>
    %50 = vector.extract_strided_slice %48 {offsets = [0, 0], sizes = [16, 143], strides = [1, 1]} : vector<16x144xf32> to vector<16x143xf32>
    %51 = tpu.concatenate %49, %50 in 1 : vector<16x1xf32>, vector<16x143xf32> -> vector<16x144xf32>
    %52 = vector.extract_strided_slice %48 {offsets = [0, 1], sizes = [16, 143], strides = [1, 1]} : vector<16x144xf32> to vector<16x143xf32>
    %53 = vector.extract_strided_slice %48 {offsets = [0, 0], sizes = [16, 1], strides = [1, 1]} : vector<16x144xf32> to vector<16x1xf32>
    %54 = tpu.concatenate %52, %53 in 1 : vector<16x143xf32>, vector<16x1xf32> -> vector<16x144xf32>
    %55 = tpu.concatenate %51, %48, %54 in 0 : vector<16x144xf32>, vector<16x144xf32>, vector<16x144xf32> -> vector<48x144xf32>
    %c0_18 = arith.constant 0 : index
    %c0_19 = arith.constant 0 : index
    %c0_20 = arith.constant 0 : index
    %56 = vector.load %arg9[%c0_18, %c0_19, %c0_20] : memref<3x32x48xf32, #tpu.memory_space<vmem>>, vector<1x32x48xf32>
    %57 = vector.shape_cast %56 : vector<1x32x48xf32> to vector<32x48xf32>
    %cst_21 = arith.constant dense<0.000000e+00> : vector<32x144xf32>
    %58 = tpu.matmul %57, %55, %cst_21 {dimension_numbers = #tpu.dot_dimension_numbers<[1], [0], [0], [1], [0, 0, 1, 1], [], []>} : vector<32x48xf32>, vector<48x144xf32>, vector<32x144xf32> -> vector<32x144xf32>
    %59 = vector.extract_strided_slice %46 {offsets = [0, 0], sizes = [32, 144], strides = [1, 1]} : vector<112x144xf32> to vector<32x144xf32>
    %60 = arith.addf %58, %59 : vector<32x144xf32>
    %c0_22 = arith.constant 0 : index
    %c0_23 = arith.constant 0 : index
    %c0_24 = arith.constant 0 : index
    %61 = vector.load %arg10[%c0_22, %c0_23, %c0_24] : memref<3x32x1xf32, #tpu.memory_space<vmem>>, vector<1x32x1xf32>
    %62 = vector.shape_cast %61 : vector<1x32x1xf32> to vector<32x1xf32>
    %63 = vector.broadcast %62 : vector<32x1xf32> to vector<32x144xf32>
    %64 = arith.addf %60, %63 : vector<32x144xf32>
    %65 = vector.extract_strided_slice %64 {offsets = [0, 0], sizes = [16, 144], strides = [1, 1]} : vector<32x144xf32> to vector<16x144xf32>
    %66 = arith.negf %65 : vector<16x144xf32>
    %67 = math.exp %66 : vector<16x144xf32>
    %cst_25 = arith.constant 1.000000e+00 : f32
    %68 = vector.broadcast %cst_25 : f32 to vector<16x144xf32>
    %69 = arith.addf %68, %67 : vector<16x144xf32>
    %70 = arith.divf %68, %69 : vector<16x144xf32>
    %71 = vector.extract_strided_slice %64 {offsets = [16, 0], sizes = [16, 144], strides = [1, 1]} : vector<32x144xf32> to vector<16x144xf32>
    %72 = math.tanh %71 : vector<16x144xf32>
    %73 = arith.mulf %70, %72 : vector<16x144xf32>
    %c0_26 = arith.constant 0 : index
    %c0_27 = arith.constant 0 : index
    %c0_28 = arith.constant 0 : index
    %74 = vector.load %arg11[%c0_26, %c0_27, %c0_28] : memref<3x32x16xf32, #tpu.memory_space<vmem>>, vector<1x32x16xf32>
    %75 = vector.shape_cast %74 : vector<1x32x16xf32> to vector<32x16xf32>
    %cst_29 = arith.constant dense<0.000000e+00> : vector<32x144xf32>
    %76 = tpu.matmul %75, %73, %cst_29 {dimension_numbers = #tpu.dot_dimension_numbers<[1], [0], [0], [1], [0, 0, 1, 1], [], []>} : vector<32x16xf32>, vector<16x144xf32>, vector<32x144xf32> -> vector<32x144xf32>
    %c0_30 = arith.constant 0 : index
    %c0_31 = arith.constant 0 : index
    %c0_32 = arith.constant 0 : index
    %77 = vector.load %arg12[%c0_30, %c0_31, %c0_32] : memref<3x32x1xf32, #tpu.memory_space<vmem>>, vector<1x32x1xf32>
    %78 = vector.shape_cast %77 : vector<1x32x1xf32> to vector<32x1xf32>
    %79 = vector.broadcast %78 : vector<32x1xf32> to vector<32x144xf32>
    %80 = arith.addf %76, %79 : vector<32x144xf32>
    %81 = vector.extract_strided_slice %80 {offsets = [0, 0], sizes = [16, 144], strides = [1, 1]} : vector<32x144xf32> to vector<16x144xf32>
    %82 = arith.addf %39, %81 : vector<16x144xf32>
    %83 = vector.extract_strided_slice %80 {offsets = [16, 0], sizes = [16, 144], strides = [1, 1]} : vector<32x144xf32> to vector<16x144xf32>
    %84 = arith.addf %44, %83 : vector<16x144xf32>
    %85 = vector.broadcast %15 : vector<1x144xf32> to vector<16x144xf32>
    %86 = arith.mulf %82, %85 : vector<16x144xf32>
    %87 = vector.extract_strided_slice %86 {offsets = [0, 142], sizes = [16, 2], strides = [1, 1]} : vector<16x144xf32> to vector<16x2xf32>
    %88 = vector.extract_strided_slice %86 {offsets = [0, 0], sizes = [16, 142], strides = [1, 1]} : vector<16x144xf32> to vector<16x142xf32>
    %89 = tpu.concatenate %87, %88 in 1 : vector<16x2xf32>, vector<16x142xf32> -> vector<16x144xf32>
    %90 = vector.extract_strided_slice %86 {offsets = [0, 2], sizes = [16, 142], strides = [1, 1]} : vector<16x144xf32> to vector<16x142xf32>
    %91 = vector.extract_strided_slice %86 {offsets = [0, 0], sizes = [16, 2], strides = [1, 1]} : vector<16x144xf32> to vector<16x2xf32>
    %92 = tpu.concatenate %90, %91 in 1 : vector<16x142xf32>, vector<16x2xf32> -> vector<16x144xf32>
    %93 = tpu.concatenate %89, %86, %92 in 0 : vector<16x144xf32>, vector<16x144xf32>, vector<16x144xf32> -> vector<48x144xf32>
    %c1 = arith.constant 1 : index
    %c0_33 = arith.constant 0 : index
    %c0_34 = arith.constant 0 : index
    %94 = vector.load %arg9[%c1, %c0_33, %c0_34] : memref<3x32x48xf32, #tpu.memory_space<vmem>>, vector<1x32x48xf32>
    %95 = vector.shape_cast %94 : vector<1x32x48xf32> to vector<32x48xf32>
    %cst_35 = arith.constant dense<0.000000e+00> : vector<32x144xf32>
    %96 = tpu.matmul %95, %93, %cst_35 {dimension_numbers = #tpu.dot_dimension_numbers<[1], [0], [0], [1], [0, 0, 1, 1], [], []>} : vector<32x48xf32>, vector<48x144xf32>, vector<32x144xf32> -> vector<32x144xf32>
    %97 = vector.extract_strided_slice %46 {offsets = [32, 0], sizes = [32, 144], strides = [1, 1]} : vector<112x144xf32> to vector<32x144xf32>
    %98 = arith.addf %96, %97 : vector<32x144xf32>
    %c1_36 = arith.constant 1 : index
    %c0_37 = arith.constant 0 : index
    %c0_38 = arith.constant 0 : index
    %99 = vector.load %arg10[%c1_36, %c0_37, %c0_38] : memref<3x32x1xf32, #tpu.memory_space<vmem>>, vector<1x32x1xf32>
    %100 = vector.shape_cast %99 : vector<1x32x1xf32> to vector<32x1xf32>
    %101 = vector.broadcast %100 : vector<32x1xf32> to vector<32x144xf32>
    %102 = arith.addf %98, %101 : vector<32x144xf32>
    %103 = vector.extract_strided_slice %102 {offsets = [0, 0], sizes = [16, 144], strides = [1, 1]} : vector<32x144xf32> to vector<16x144xf32>
    %104 = arith.negf %103 : vector<16x144xf32>
    %105 = math.exp %104 : vector<16x144xf32>
    %cst_39 = arith.constant 1.000000e+00 : f32
    %106 = vector.broadcast %cst_39 : f32 to vector<16x144xf32>
    %107 = arith.addf %106, %105 : vector<16x144xf32>
    %108 = arith.divf %106, %107 : vector<16x144xf32>
    %109 = vector.extract_strided_slice %102 {offsets = [16, 0], sizes = [16, 144], strides = [1, 1]} : vector<32x144xf32> to vector<16x144xf32>
    %110 = math.tanh %109 : vector<16x144xf32>
    %111 = arith.mulf %108, %110 : vector<16x144xf32>
    %c1_40 = arith.constant 1 : index
    %c0_41 = arith.constant 0 : index
    %c0_42 = arith.constant 0 : index
    %112 = vector.load %arg11[%c1_40, %c0_41, %c0_42] : memref<3x32x16xf32, #tpu.memory_space<vmem>>, vector<1x32x16xf32>
    %113 = vector.shape_cast %112 : vector<1x32x16xf32> to vector<32x16xf32>
    %cst_43 = arith.constant dense<0.000000e+00> : vector<32x144xf32>
    %114 = tpu.matmul %113, %111, %cst_43 {dimension_numbers = #tpu.dot_dimension_numbers<[1], [0], [0], [1], [0, 0, 1, 1], [], []>} : vector<32x16xf32>, vector<16x144xf32>, vector<32x144xf32> -> vector<32x144xf32>
    %c1_44 = arith.constant 1 : index
    %c0_45 = arith.constant 0 : index
    %c0_46 = arith.constant 0 : index
    %115 = vector.load %arg12[%c1_44, %c0_45, %c0_46] : memref<3x32x1xf32, #tpu.memory_space<vmem>>, vector<1x32x1xf32>
    %116 = vector.shape_cast %115 : vector<1x32x1xf32> to vector<32x1xf32>
    %117 = vector.broadcast %116 : vector<32x1xf32> to vector<32x144xf32>
    %118 = arith.addf %114, %117 : vector<32x144xf32>
    %119 = vector.extract_strided_slice %118 {offsets = [0, 0], sizes = [16, 144], strides = [1, 1]} : vector<32x144xf32> to vector<16x144xf32>
    %120 = arith.addf %82, %119 : vector<16x144xf32>
    %121 = vector.extract_strided_slice %118 {offsets = [16, 0], sizes = [16, 144], strides = [1, 1]} : vector<32x144xf32> to vector<16x144xf32>
    %122 = arith.addf %84, %121 : vector<16x144xf32>
    %123 = vector.broadcast %15 : vector<1x144xf32> to vector<16x144xf32>
    %124 = arith.mulf %120, %123 : vector<16x144xf32>
    %125 = vector.extract_strided_slice %124 {offsets = [0, 140], sizes = [16, 4], strides = [1, 1]} : vector<16x144xf32> to vector<16x4xf32>
    %126 = vector.extract_strided_slice %124 {offsets = [0, 0], sizes = [16, 140], strides = [1, 1]} : vector<16x144xf32> to vector<16x140xf32>
    %127 = tpu.concatenate %125, %126 in 1 : vector<16x4xf32>, vector<16x140xf32> -> vector<16x144xf32>
    %128 = vector.extract_strided_slice %124 {offsets = [0, 4], sizes = [16, 140], strides = [1, 1]} : vector<16x144xf32> to vector<16x140xf32>
    %129 = vector.extract_strided_slice %124 {offsets = [0, 0], sizes = [16, 4], strides = [1, 1]} : vector<16x144xf32> to vector<16x4xf32>
    %130 = tpu.concatenate %128, %129 in 1 : vector<16x140xf32>, vector<16x4xf32> -> vector<16x144xf32>
    %131 = tpu.concatenate %127, %124, %130 in 0 : vector<16x144xf32>, vector<16x144xf32>, vector<16x144xf32> -> vector<48x144xf32>
    %c2 = arith.constant 2 : index
    %c0_47 = arith.constant 0 : index
    %c0_48 = arith.constant 0 : index
    %132 = vector.load %arg9[%c2, %c0_47, %c0_48] : memref<3x32x48xf32, #tpu.memory_space<vmem>>, vector<1x32x48xf32>
    %133 = vector.shape_cast %132 : vector<1x32x48xf32> to vector<32x48xf32>
    %cst_49 = arith.constant dense<0.000000e+00> : vector<32x144xf32>
    %134 = tpu.matmul %133, %131, %cst_49 {dimension_numbers = #tpu.dot_dimension_numbers<[1], [0], [0], [1], [0, 0, 1, 1], [], []>} : vector<32x48xf32>, vector<48x144xf32>, vector<32x144xf32> -> vector<32x144xf32>
    %135 = vector.extract_strided_slice %46 {offsets = [64, 0], sizes = [32, 144], strides = [1, 1]} : vector<112x144xf32> to vector<32x144xf32>
    %136 = arith.addf %134, %135 : vector<32x144xf32>
    %c2_50 = arith.constant 2 : index
    %c0_51 = arith.constant 0 : index
    %c0_52 = arith.constant 0 : index
    %137 = vector.load %arg10[%c2_50, %c0_51, %c0_52] : memref<3x32x1xf32, #tpu.memory_space<vmem>>, vector<1x32x1xf32>
    %138 = vector.shape_cast %137 : vector<1x32x1xf32> to vector<32x1xf32>
    %139 = vector.broadcast %138 : vector<32x1xf32> to vector<32x144xf32>
    %140 = arith.addf %136, %139 : vector<32x144xf32>
    %141 = vector.extract_strided_slice %140 {offsets = [0, 0], sizes = [16, 144], strides = [1, 1]} : vector<32x144xf32> to vector<16x144xf32>
    %142 = arith.negf %141 : vector<16x144xf32>
    %143 = math.exp %142 : vector<16x144xf32>
    %cst_53 = arith.constant 1.000000e+00 : f32
    %144 = vector.broadcast %cst_53 : f32 to vector<16x144xf32>
    %145 = arith.addf %144, %143 : vector<16x144xf32>
    %146 = arith.divf %144, %145 : vector<16x144xf32>
    %147 = vector.extract_strided_slice %140 {offsets = [16, 0], sizes = [16, 144], strides = [1, 1]} : vector<32x144xf32> to vector<16x144xf32>
    %148 = math.tanh %147 : vector<16x144xf32>
    %149 = arith.mulf %146, %148 : vector<16x144xf32>
    %c2_54 = arith.constant 2 : index
    %c0_55 = arith.constant 0 : index
    %c0_56 = arith.constant 0 : index
    %150 = vector.load %arg11[%c2_54, %c0_55, %c0_56] : memref<3x32x16xf32, #tpu.memory_space<vmem>>, vector<1x32x16xf32>
    %151 = vector.shape_cast %150 : vector<1x32x16xf32> to vector<32x16xf32>
    %cst_57 = arith.constant dense<0.000000e+00> : vector<32x144xf32>
    %152 = tpu.matmul %151, %149, %cst_57 {dimension_numbers = #tpu.dot_dimension_numbers<[1], [0], [0], [1], [0, 0, 1, 1], [], []>} : vector<32x16xf32>, vector<16x144xf32>, vector<32x144xf32> -> vector<32x144xf32>
    %c2_58 = arith.constant 2 : index
    %c0_59 = arith.constant 0 : index
    %c0_60 = arith.constant 0 : index
    %153 = vector.load %arg12[%c2_58, %c0_59, %c0_60] : memref<3x32x1xf32, #tpu.memory_space<vmem>>, vector<1x32x1xf32>
    %154 = vector.shape_cast %153 : vector<1x32x1xf32> to vector<32x1xf32>
    %155 = vector.broadcast %154 : vector<32x1xf32> to vector<32x144xf32>
    %156 = arith.addf %152, %155 : vector<32x144xf32>
    %157 = vector.extract_strided_slice %156 {offsets = [0, 0], sizes = [16, 144], strides = [1, 1]} : vector<32x144xf32> to vector<16x144xf32>
    %158 = arith.addf %120, %157 : vector<16x144xf32>
    %159 = vector.extract_strided_slice %156 {offsets = [16, 0], sizes = [16, 144], strides = [1, 1]} : vector<32x144xf32> to vector<16x144xf32>
    %160 = arith.addf %122, %159 : vector<16x144xf32>
    %161 = arith.addf %160, %158 : vector<16x144xf32>
    %c0_61 = arith.constant 0 : index
    %c0_62 = arith.constant 0 : index
    %162 = vector.load %arg13[%c0_61, %c0_62] : memref<16x16xf32, #tpu.memory_space<vmem>>, vector<16x16xf32>
    %cst_63 = arith.constant 0.000000e+00 : f32
    %163 = vector.broadcast %cst_63 : f32 to vector<16x144xf32>
    %164 = arith.maximumf %161, %163 : vector<16x144xf32>
    %cst_64 = arith.constant dense<0.000000e+00> : vector<16x144xf32>
    %165 = tpu.matmul %162, %164, %cst_64 {dimension_numbers = #tpu.dot_dimension_numbers<[1], [0], [0], [1], [0, 0, 1, 1], [], []>} : vector<16x16xf32>, vector<16x144xf32>, vector<16x144xf32> -> vector<16x144xf32>
    %c0_65 = arith.constant 0 : index
    %c0_66 = arith.constant 0 : index
    %166 = vector.load %arg14[%c0_65, %c0_66] : memref<16x16xf32, #tpu.memory_space<vmem>>, vector<16x16xf32>
    %cst_67 = arith.constant 0.000000e+00 : f32
    %167 = vector.broadcast %cst_67 : f32 to vector<16x144xf32>
    %168 = arith.maximumf %158, %167 : vector<16x144xf32>
    %cst_68 = arith.constant dense<0.000000e+00> : vector<16x144xf32>
    %169 = tpu.matmul %166, %168, %cst_68 {dimension_numbers = #tpu.dot_dimension_numbers<[1], [0], [0], [1], [0, 0, 1, 1], [], []>} : vector<16x16xf32>, vector<16x144xf32>, vector<16x144xf32> -> vector<16x144xf32>
    %170 = arith.addf %165, %169 : vector<16x144xf32>
    %171 = vector.extract_strided_slice %46 {offsets = [96, 0], sizes = [16, 144], strides = [1, 1]} : vector<112x144xf32> to vector<16x144xf32>
    %172 = arith.addf %170, %171 : vector<16x144xf32>
    %c0_69 = arith.constant 0 : index
    %c0_70 = arith.constant 0 : index
    %173 = vector.load %arg15[%c0_69, %c0_70] : memref<16x1xf32, #tpu.memory_space<vmem>>, vector<16x1xf32>
    %174 = vector.broadcast %173 : vector<16x1xf32> to vector<16x144xf32>
    %175 = arith.addf %172, %174 : vector<16x144xf32>
    %cst_71 = arith.constant 0.000000e+00 : f32
    %176 = vector.broadcast %cst_71 : f32 to vector<16x144xf32>
    %177 = arith.maximumf %175, %176 : vector<16x144xf32>
    %c0_72 = arith.constant 0 : index
    %c0_73 = arith.constant 0 : index
    %178 = vector.load %arg16[%c0_72, %c0_73] : memref<64x16xf32, #tpu.memory_space<vmem>>, vector<64x16xf32>
    %cst_74 = arith.constant dense<0.000000e+00> : vector<64x144xf32>
    %179 = tpu.matmul %178, %177, %cst_74 {dimension_numbers = #tpu.dot_dimension_numbers<[1], [0], [0], [1], [0, 0, 1, 1], [], []>} : vector<64x16xf32>, vector<16x144xf32>, vector<64x144xf32> -> vector<64x144xf32>
    %c0_75 = arith.constant 0 : index
    %c0_76 = arith.constant 0 : index
    %180 = vector.load %arg17[%c0_75, %c0_76] : memref<64x1xf32, #tpu.memory_space<vmem>>, vector<64x1xf32>
    %181 = vector.broadcast %180 : vector<64x1xf32> to vector<64x144xf32>
    %182 = arith.addf %179, %181 : vector<64x144xf32>
    %183 = vector.extract_strided_slice %182 {offsets = [0, 8], sizes = [64, 128], strides = [1, 1]} : vector<64x144xf32> to vector<64x128xf32>
    %c0_77 = arith.constant 0 : index
    %c0_78 = arith.constant 0 : index
    %c0_79 = arith.constant 0 : index
    %c0_80 = arith.constant 0 : index
    %184 = vector.load %arg18[%c0_77, %c0_78, %c0_79, %c0_80] : memref<1x1x64x128xf32, #tpu.memory_space<vmem>>, vector<1x1x64x128xf32>
    %185 = vector.shape_cast %184 : vector<1x1x64x128xf32> to vector<64x128xf32>
    %186 = vector.shape_cast %183 : vector<64x128xf32> to vector<1x1x64x128xf32>
    tpu.vector_store %arg18[%c0_77, %c0_78, %c0_79, %c0_80], %186 {strides = array<i32>} : memref<1x1x64x128xf32, #tpu.memory_space<vmem>>, vector<1x1x64x128xf32>,
    return
  }
  func.func @transform_0(%arg0: i32, %arg1: i32) -> (i32, i32, i32, i32) {
    %c0_i32 = arith.constant 0 : i32
    %c0_i32_0 = arith.constant 0 : i32
    %c0_i32_1 = arith.constant 0 : i32
    return %arg0, %arg1, %c0_i32, %c0_i32_0 : i32, i32, i32, i32
  }
  func.func @transform_1(%arg0: i32, %arg1: i32) -> (i32, i32, i32, i32) {
    %c0_i32 = arith.constant 0 : i32
    %c0_i32_0 = arith.constant 0 : i32
    %c0_i32_1 = arith.constant 0 : i32
    return %arg0, %arg1, %c0_i32, %c0_i32_0 : i32, i32, i32, i32
  }
  func.func @transform_2(%arg0: i32, %arg1: i32) -> (i32, i32) {
    %c0_i32 = arith.constant 0 : i32
    %c0_i32_0 = arith.constant 0 : i32
    %c0_i32_1 = arith.constant 0 : i32
    return %c0_i32, %c0_i32_0 : i32, i32
  }
  func.func @transform_3(%arg0: i32, %arg1: i32) -> (i32, i32) {
    %c0_i32 = arith.constant 0 : i32
    %c0_i32_0 = arith.constant 0 : i32
    %c0_i32_1 = arith.constant 0 : i32
    return %c0_i32, %c0_i32_0 : i32, i32
  }
  func.func @transform_4(%arg0: i32, %arg1: i32) -> (i32, i32) {
    %c0_i32 = arith.constant 0 : i32
    %c0_i32_0 = arith.constant 0 : i32
    %c0_i32_1 = arith.constant 0 : i32
    return %c0_i32, %c0_i32_0 : i32, i32
  }
  func.func @transform_5(%arg0: i32, %arg1: i32) -> (i32, i32) {
    %c0_i32 = arith.constant 0 : i32
    %c0_i32_0 = arith.constant 0 : i32
    %c0_i32_1 = arith.constant 0 : i32
    return %c0_i32, %c0_i32_0 : i32, i32
  }
  func.func @transform_6(%arg0: i32, %arg1: i32) -> (i32, i32) {
    %c0_i32 = arith.constant 0 : i32
    %c0_i32_0 = arith.constant 0 : i32
    %c0_i32_1 = arith.constant 0 : i32
    return %c0_i32, %c0_i32_0 : i32, i32
  }
  func.func @transform_7(%arg0: i32, %arg1: i32) -> (i32, i32, i32) {
    %c0_i32 = arith.constant 0 : i32
    %c0_i32_0 = arith.constant 0 : i32
    %c0_i32_1 = arith.constant 0 : i32
    %c0_i32_2 = arith.constant 0 : i32
    return %c0_i32, %c0_i32_0, %c0_i32_1 : i32, i32, i32
  }
  func.func @transform_8(%arg0: i32, %arg1: i32) -> (i32, i32, i32) {
    %c0_i32 = arith.constant 0 : i32
    %c0_i32_0 = arith.constant 0 : i32
    %c0_i32_1 = arith.constant 0 : i32
    %c0_i32_2 = arith.constant 0 : i32
    return %c0_i32, %c0_i32_0, %c0_i32_1 : i32, i32, i32
  }
  func.func @transform_9(%arg0: i32, %arg1: i32) -> (i32, i32, i32) {
    %c0_i32 = arith.constant 0 : i32
    %c0_i32_0 = arith.constant 0 : i32
    %c0_i32_1 = arith.constant 0 : i32
    %c0_i32_2 = arith.constant 0 : i32
    return %c0_i32, %c0_i32_0, %c0_i32_1 : i32, i32, i32
  }
  func.func @transform_10(%arg0: i32, %arg1: i32) -> (i32, i32, i32) {
    %c0_i32 = arith.constant 0 : i32
    %c0_i32_0 = arith.constant 0 : i32
    %c0_i32_1 = arith.constant 0 : i32
    %c0_i32_2 = arith.constant 0 : i32
    return %c0_i32, %c0_i32_0, %c0_i32_1 : i32, i32, i32
  }
  func.func @transform_11(%arg0: i32, %arg1: i32) -> (i32, i32) {
    %c0_i32 = arith.constant 0 : i32
    %c0_i32_0 = arith.constant 0 : i32
    %c0_i32_1 = arith.constant 0 : i32
    return %c0_i32, %c0_i32_0 : i32, i32
  }
  func.func @transform_12(%arg0: i32, %arg1: i32) -> (i32, i32) {
    %c0_i32 = arith.constant 0 : i32
    %c0_i32_0 = arith.constant 0 : i32
    %c0_i32_1 = arith.constant 0 : i32
    return %c0_i32, %c0_i32_0 : i32, i32
  }
  func.func @transform_13(%arg0: i32, %arg1: i32) -> (i32, i32) {
    %c0_i32 = arith.constant 0 : i32
    %c0_i32_0 = arith.constant 0 : i32
    %c0_i32_1 = arith.constant 0 : i32
    return %c0_i32, %c0_i32_0 : i32, i32
  }
  func.func @transform_14(%arg0: i32, %arg1: i32) -> (i32, i32) {
    %c0_i32 = arith.constant 0 : i32
    %c0_i32_0 = arith.constant 0 : i32
    %c0_i32_1 = arith.constant 0 : i32
    return %c0_i32, %c0_i32_0 : i32, i32
  }
  func.func @transform_15(%arg0: i32, %arg1: i32) -> (i32, i32) {
    %c0_i32 = arith.constant 0 : i32
    %c0_i32_0 = arith.constant 0 : i32
    %c0_i32_1 = arith.constant 0 : i32
    return %c0_i32, %c0_i32_0 : i32, i32
  }
  func.func @transform_16(%arg0: i32, %arg1: i32) -> (i32, i32, i32, i32) {
    %c0_i32 = arith.constant 0 : i32
    %c0_i32_0 = arith.constant 0 : i32
    %c0_i32_1 = arith.constant 0 : i32
    return %arg0, %arg1, %c0_i32, %c0_i32_0 : i32, i32, i32, i32
  }
}

</mosaic_0001>

<bundles_post_ra>
// kernel: tpu_custom_call.1
= control target key start
LH: loop header
LB: loop body
LE: loop exit
PB: predicated region body
PF: predicated region fallthrough
CT: control target
= control target key end

     0   :  { %s4099_s0 = inlined_call_operand.vmem [shape: f32[2,1,1,144], index: 0, kind: input, shape index: {}]   ;;  %s4100_s1 = inlined_call_operand.vmem [shape: f32[2,1,8,144], index: 1, kind: input, shape index: {}]   ;;  %s4101_s2 = inlined_call_operand.vmem [shape: f32[16,3], index: 2, kind: input, shape index: {}]   ;;  %s4102_s3 = inlined_call_operand.vmem [shape: f32[16,1], index: 3, kind: input, shape index: {}]   ;;  %s4103_s4 = inlined_call_operand.vmem [shape: f32[16,16], index: 4, kind: input, shape index: {}]   ;;  %s4104_s5 = inlined_call_operand.vmem [shape: f32[16,1], index: 5, kind: input, shape index: {}]   ;;  %s4105_s6 = inlined_call_operand.vmem [shape: f32[112,8], index: 6, kind: input, shape index: {}]   ;;  %s4106_s7 = inlined_call_operand.vmem [shape: f32[3,32,48], index: 7, kind: input, shape index: {}]   ;;  %s4107_s8 = inlined_call_operand.vmem [shape: f32[3,32,1], index: 8, kind: input, shape index: {}]   ;;  %s4108_s9 = inlined_call_operand.vmem [shape: f32[3,32,16], index: 9, kind: input, shape index: {}]   ;;  %s4109_s10 = inlined_call_operand.vmem [shape: f32[3,32,1], index: 10, kind: input, shape index: {}]   ;;  %s4110_s11 = inlined_call_operand.vmem [shape: f32[16,16], index: 11, kind: input, shape index: {}]   ;;  %s4111_s12 = inlined_call_operand.vmem [shape: f32[16,16], index: 12, kind: input, shape index: {}]   ;;  %s4112_s13 = inlined_call_operand.vmem [shape: f32[16,1], index: 13, kind: input, shape index: {}]   ;;  %s4113_s14 = inlined_call_operand.vmem [shape: f32[64,16], index: 14, kind: input, shape index: {}]   ;;  %s4114_s15 = inlined_call_operand.vmem [shape: f32[64,1], index: 15, kind: input, shape index: {}]   ;;  %s4115_s16 = inlined_call_operand.hbm [shape: f32[2,1,64,128], index: 16, kind: output, shape index: {}]  }
   0x1   :  { %4124 = sst [smem:[#allocation8_spill]] %s4099_s0 }
   0x2   :  { %4125 = sst [smem:[#allocation9_spill]] %s4100_s1 }
   0x3   :  { %4126 = sst [smem:[#allocation10_spill]] %s4101_s2 }
   0x4   :  { %4127 = sst [smem:[#allocation11_spill]] %s4102_s3 }
   0x5   :  { %21 = vsyncpa [#allocation3], 0 }
   0x6   :  { %23 = vsyncpa [#allocation3 + $0x1], 0  ;;  %s3360_s21 = smov 0   ;;  %s3362_s22 = smov 0  }
   0x7   :  { %s3364_s23 = smov 0   ;;  %s3366_s24 = smov 0  }
   0x8   :  { %s3368_s25 = smov 0   ;;  %s3370_s26 = smov 0  }
   0x9 LB: > { %4128 = sst [smem:[#allocation5_spill]] %s3249_s25  ;;  %s2697_s27 = sadd.s32 4294967295, %s3253_s26   ;;  %s3253_s26 = sphi %s3370_s26, %s29_s26   ;;  %s3249_s25 = sphi %s3368_s25, %s4143_s25   ;;  %s3245_s24 = sphi %s3366_s24, %s4142_s24   ;;  %s3241_s23 = sphi %s3364_s23, %s4146_s23   ;;  %s3237_s22 = sphi %s3362_s22, %s4145_s22   ;;  %s3233_s21 = sphi %s3360_s21, %s4144_s21  }
   0xa   : > { %s2698_s28 = sadd.s32 4294967294, %s3253_s26   ;;  %s41_s29 = sadd.s32 1, %s3249_s25 }
   0xb   : > { %s400_s30 = sadd.s32 1, %s3241_s23  ;;  %p43_p0 = scmp.ge.s32.totalorder %s41_s29, 2 }
   0xc   : > { %p410_p1 = scmp.ne.s32.totalorder %s3241_s23, %s3237_s22  ;;  %p411_p2 = scmp.eq.s32.totalorder %s2697_s27, 1 }
   0xd   : > { %p416_p3 = scmp.ne.s32.totalorder %s3237_s22, %s3233_s21  ;;  %s4148_s29 = smov (%p43_p0, %s41_s29), 0 }
   0xe   : > { %4129 = sst [smem:[#allocation6_spill]] %s4148_s29  ;;  %p3400_p4 = por %p411_p2, %p410_p1 }
   0xf   : > { %p417_p5 = scmp.eq.s32.totalorder %s2698_s28, 1  ;;  %s395_s17 = ssub.s32 %s3249_s25, %s4148_s29 }
  0x10   : > { %p2701_p6 = scmp.ge.s32.totalorder %s3253_s26, 1  ;;  %p398_p7 = scmp.eq.s32.totalorder %s395_s17, 0 }
  0x11   : > { %p3407_p8 = por %p417_p5, %p416_p3  ;;  %p500_p9 = scmp.lt.s32.totalorder %s3253_s26, 3 }
  0x12   : > { %s3413_s19 = scalar_select %p398_p7, %s3241_s23, %s400_s30  }
  0x13   : > { %p501_p10 = pnand %p2701_p6, %p500_p9 }
  0x14   : > { %4132 = sst [smem:[#allocation7_spill]] %s3413_s19  ;;  %s4133_s2 = sld [smem:[#allocation10_spill]] (!%p501_p10)  ;;  %v582_v1 = vlaneseq (!%p501_p10)  ;;  %v3255_v2 = vmov (!%p501_p10), 2   ;;  %v3256_v3 = vmov (!%p501_p10), 1   ;;  %v3257_v6 = vmov (!%p501_p10), 0   ;;  %v814_v17 = vld [vmem:[%s4105_s6] sm:$0xff] (!%p501_p10) }
  0x15   : > { %504 = sbr.rel (%p501_p10) target bundleno = 2639 (0xa4f), region = 84  ;;  %p562_p11 = scmp.lt.s32.totalorder (!%p501_p10), %s3245_s24, 1  ;;  %3009 = vset.pattern.permute.xlu0 (!%p501_p10), %v3255_v2  ;;  %3008 = vset.pattern.permute.xlu1 (!%p501_p10), %v3256_v3  ;;  %v3262_v14 = vmov (!%p501_p10), 0.0   ;;  %vm828_vm0 = vcmask (!%p501_p10), 64512   ;;  %v815_v18 = vld [vmem:[%s4105_s6 + $0x8] sm:$0xff] (!%p501_p10)  ;;  %v816_v19 = vld [vmem:[%s4105_s6 + $0x10] sm:$0xff] (!%p501_p10) }
  0x16   : > { %v604_v5 = vshrl.u32 (!%p501_p10), %v582_v1, 7  ;;  %s4134_s25 = sld [smem:[#allocation8_spill]] (!%p501_p10)  ;;  %s4119_s30 = smov (!%p501_p10), 1   ;;  %935 = vmatprep.mubr.f32.mxu1 (!%p501_p10), %v3262_v14  ;;  %801 = vmatprep.mubr.f32.mxu0 (!%p501_p10), %v3262_v14  ;;  %v817_v20 = vld [vmem:[%s4105_s6 + $0x18] sm:$0xff] (!%p501_p10)  ;;  %v818_v21 = vld [vmem:[%s4105_s6 + $0x20] sm:$0xff] (!%p501_p10)  ;;  %v819_v22 = vld [vmem:[%s4105_s6 + $0x28] sm:$0xff] (!%p501_p10) }
  0x17   : > { %s4122_s29 = smov (!%p501_p10), 127   ;;  %s4135_s3 = sld [smem:[#allocation11_spill]] (!%p501_p10)  ;;  %v820_v23 = vld [vmem:[%s4105_s6 + $0x30] sm:$0xff] (!%p501_p10)  ;;  %v821_v24 = vld [vmem:[%s4105_s6 + $0x38] sm:$0xff] (!%p501_p10)  ;;  %v822_v25 = vld [vmem:[%s4105_s6 + $0x40] sm:$0xff] (!%p501_p10)  ;;  %vm618_vm1 = vcmask (!%p501_p10), 7168  }
  0x18   : > { %v3430_v7 = vsub.s32 (!%p501_p10), 0, %v604_v5  ;;  %v605_v8 = vsub.s32 (!%p501_p10), 1, %v604_v5  ;;  %s4136_s1 = sld [smem:[#allocation9_spill]] (!%p501_p10)  ;;  %v583_v32 = vand.u32 (!%p501_p10), 127, %v582_v1  ;;  %vm667_vm2 = vcmask (!%p501_p10), 1039360   ;;  %v823_v56 = vld [vmem:[%s4105_s6 + $0x48] sm:$0xff] (!%p501_p10) }
  0x19   : > { %vm674_vm3 = vcmask (!%p501_p10), 121856   ;;  %s4138_s17 = smov (!%p501_p10), 1   ;;  %s4139_s27 = smov (!%p501_p10), 15   ;;  %vm1076_vm7 = vcmask (!%p501_p10), 392192   ;;  %vm730_vm8 = vcmask (!%p501_p10), 130048   ;;  %vm1401_vm9 = vcmask (!%p501_p10), 15360  }
  0x1a   : > { %v600_v0 = vld [vmem:[%s4133_s2] sm:$0xff] (!%p501_p10)  ;;  %v601_v4 = vld [vmem:[%s4133_s2 + $0x8] sm:$0xff] (!%p501_p10)  ;;  %v588_v37 = vadd.s32 (!%p501_p10), 4294967288, %v583_v32  ;;  %s3266_s2 = smov (!%p501_p10), 14   ;;  %vm1431_vm10 = vcmask (!%p501_p10), 113664   ;;  %vm1418_vm11 = vcmask (!%p501_p10), 1031168  }
  0x1b   : > { %677 = vperm.xlu0 (!%p501_p10), %3009, %v600_v0   ;;  %646 = vperm.xlu1 (!%p501_p10), %3008, %v600_v0   ;;  %v1179_v32 = vld [vmem:[%s4107_s8 + $0x8] sm:$0xff] (!%p501_p10)  ;;  %vm1766_vm12 = vcmask (!%p501_p10), 31744   ;;  %vm1796_vm13 = vcmask (!%p501_p10), 97280   ;;  %vm1783_vm14 = vcmask (!%p501_p10), 1014784   ;;  %vm2556_vm15 = vcmask (!%p501_p10), 982016  }
  0x1c   : > { %s3420_s28 = scalar_select %p562_p11, %s3245_s24, 1  ;;  %vm590_vm4 = vcmp.ge.s32.totalorder %v588_v37, 0  ;;  %vm592_vm5 = vcmp.lt.s32.totalorder %v588_v37, 16 }
  0x1d   : > { %v701_v12 = vld [vmem:[%s4135_s3 + $0x8] sm:$0xff]  ;;  %v700_v13 = vld [vmem:[%s4135_s3] sm:$0xff]  ;;  %vm594_vm6 = vmand %vm590_vm4, %vm592_vm5  ;;  %s3267_s3 = smov 4  }
  0x1e   : > { %s2703_s20 = sshll.u32 %s3420_s28, 1 }
  0x1f   : > { %s569_s19 = scalar_lea.vmem %s4134_s25, %s2703_s20  ;;  %3010 = vset.pattern.permute.xlu0 %v3257_v6  ;;  %650 = vperm.xlu1 %3008, %v601_v4   ;;  %s4118_s25 = smov 113  }
  0x20   : > { %625 = vperm.xlu0 %3010, %v600_v0   ;;  %v579_v9 = vld [vmem:[%s569_s19] sm:$0x3]  ;;  %s4121_s19 = smov 15  }
  0x21   : > { %v3433_v10 = vrot.slane %v579_v9, %v3430_v7  ;;  %v3435_v11 = vrot.slane %v579_v9, %v605_v8 }
  0x23   : > { %3011 = vset.pattern.permute.xlu1 %v3255_v2 }
  0x24   : > { %630 = vperm.xlu0 %3010, %v601_v4   ;;  %681 = vperm.xlu1 %3011, %v601_v4  }
  0x28   : > { %614 = vrot.lane.b32.xlu0 %v3433_v10, %s4119_s30  ;;  %607 = vrot.lane.b32.xlu1 %v3435_v11, %s4118_s25  ;;  %s3264_s25 = smov 114  }
  0x29   : > { %3012 = vset.pattern.permute.xlu1 %v3257_v6  ;;  %v824_v6 = vld [vmem:[%s4105_s6 + $0x50] sm:$0xff] }
  0x2c   : > { %663 = vrot.lane.b32.xlu0 %v3433_v10, %s4122_s29  ;;  %616 = vrot.lane.b32.xlu1 %v3435_v11, %s4119_s30  ;;  %s2808_s30 = sshll.u32 %s3420_s28, 4  ;;  %s559_s28 = sand.u32 1, %s3237_s22  }
  0x30   : > { %671 = vrot.lane.b32.xlu0 %v3433_v10, %s4121_s19  ;;  %665 = vrot.lane.b32.xlu1 %v3435_v11, %s4122_s29  ;;  %s578_s29 = scalar_lea.vmem %s4136_s1, %s2808_s30  ;;  %s4137_s30 = smov 113  }
  0x31   : > { %v581_v15 = vld [vmem:[%s578_s29 + $0x8] sm:$0xff]  ;;  %v580_v16 = vld [vmem:[%s578_s29] sm:$0xff]  ;;  %s3268_s29 = smov 116   ;;  %s3269_s19 = smov 124  }
  0x32   : > { %871 = vmatprep.subr.mxu1 %v581_v15  ;;  %s2702_s1 = sshll.u32 %s559_s28, 6 }
  0x33   : > { %872 = vmatpush1.msra.mxu1 %v580_v16 }
  0x34   : > { %709 = vperm.xlu0 %3010, %v701_v12   ;;  %704 = vperm.xlu1 %3012, %v700_v13  }
  0x35   : > { %2709 = vmatmul.mubr.msk.f32.vlgmr.msra.gmra.mrb[0].mxu1 %vm828_vm0, %v814_v17 }
  0x36   : > { %941 = vmatprep.mubr.f32.mxu1 %v3262_v14 }
  0x39   : > { %2710 = vmatmul.mubr.msk.f32.gmra.mrb[2].mxu1 %vm828_vm0, %v815_v18  ;;  %v825_v18 = vld [vmem:[%s4105_s6 + $0x58] sm:$0xff] }
  0x3a   : > { %947 = vmatprep.mubr.f32.mxu1 %v3262_v14 }
  0x3d   : > { %2711 = vmatmul.mubr.msk.f32.gmra.mrb[4].mxu1 %vm828_vm0, %v816_v19 }
  0x3e   : > { %953 = vmatprep.mubr.f32.mxu1 %v3262_v14 }
  0x41   : > { %2712 = vmatmul.mubr.msk.f32.gmra.mrb[6].mxu1 %vm828_vm0, %v817_v20 }
  0x42   : > { %959 = vmatprep.mubr.f32.mxu1 %v3262_v14 }
  0x45   : > { %2713 = vmatmul.mubr.msk.f32.gmra.mrb[8].mxu1 %vm828_vm0, %v818_v21 }
  0x46   : > { %965 = vmatprep.mubr.f32.mxu1 %v3262_v14 }
  0x49   : > { %2714 = vmatmul.mubr.msk.f32.gmra.mrb[10].mxu1 %vm828_vm0, %v819_v22 }
  0x4a   : > { %971 = vmatprep.mubr.f32.mxu1 %v3262_v14 }
  0x4d   : > { %2715 = vmatmul.mubr.msk.f32.gmra.mrb[12].mxu1 %vm828_vm0, %v820_v23 }
  0x4e   : > { %977 = vmatprep.mubr.f32.mxu1 %v3262_v14 }
  0x51   : > { %2716 = vmatmul.mubr.msk.f32.gmra.mrb[14].mxu1 %vm828_vm0, %v821_v24 }
  0x52   : > { %983 = vmatprep.mubr.f32.mxu1 %v3262_v14 }
  0x55   : > { %2717 = vmatmul.mubr.msk.f32.gmra.mrb[16].mxu1 %vm828_vm0, %v822_v25  ;;  %v826_v25 = vld [vmem:[%s4105_s6 + $0x60] sm:$0xff] }
  0x56   : > { %989 = vmatprep.mubr.f32.mxu1 %v3262_v14 }
  0x59   : > { %2718 = vmatmul.mubr.msk.f32.gmra.mrb[18].mxu1 %vm828_vm0, %v823_v56 }
  0x5a   : > { %995 = vmatprep.mubr.f32.mxu1 %v3262_v14 }
  0x5d   : > { %2719 = vmatmul.mubr.msk.f32.gmra.mrb[20].mxu1 %vm828_vm0, %v824_v6 }
  0x5e   : > { %1001 = vmatprep.mubr.f32.mxu1 %v3262_v14 }
  0x61   : > { %2720 = vmatmul.mubr.msk.f32.gmra.mrb[22].mxu1 %vm828_vm0, %v825_v18  ;;  %v1075_v18 = vld [vmem:[%s4106_s7 + $0x18] sm:$0xff] }
  0x62   : > { %1007 = vmatprep.mubr.f32.mxu1 %v3262_v14 }
  0x65   : > { %2721 = vmatmul.mubr.msk.f32.gmra.mrb[24].mxu1 %vm828_vm0, %v826_v25 }
  0x66   : > { %1013 = vmatprep.mubr.f32.mxu1 %v3262_v14 }
  0x9a   : > { %v678_v26 = vpop.permute.xlu0 %677  ;;  %v647_v27 = vpop.permute.xlu1 %646 }
  0x9b   : > { %v655_v44 = vmul.f32 %v647_v27, %v3433_v10  ;;  %v656_v45 = vmul.f32 %v647_v27, %v3435_v11 }
  0x9e   : > { %v651_v28 = vpop.permute.xlu1 %650 }
  0x9f   : > { %v626_v29 = vpop.permute.xlu0 %625  ;;  %v657_v50 = vmul.f32 %v651_v28, %v3433_v10  ;;  %v658_v51 = vmul.f32 %v651_v28, %v3435_v11  ;;  %v827_v28 = vld [vmem:[%s4105_s6 + $0x68] sm:$0xff] }
  0xa0   : > { %2722 = vmatmul.mubr.msk.f32.gmra.mrb[26].mxu1 %vm828_vm0, %v827_v28 }
  0xa1   : > { %1153 = vmatprep.mubr.f32.mxu1 %v3262_v14 }
  0xa3   : > { %v631_v30 = vpop.permute.xlu0 %630  ;;  %v682_v31 = vpop.permute.xlu1 %681 }
  0xa7   : > { %v615_v33 = vpop.permute.xlu0 %614  ;;  %v608_v34 = vpop.permute.xlu1 %607 }
  0xa8   : > { %v622_v35 = vsel %vm618_vm1, %v608_v34, %v615_v33  ;;  %v1247_v34 = vld [vmem:[%s4109_s10 + $0x8] sm:$0xff] }
  0xa9   : > { %v636_v36 = vrot.slane %v622_v35, %v3430_v7 }
  0xab   : > { %v664_v38 = vpop.permute.xlu0 %663  ;;  %v617_v39 = vpop.permute.xlu1 %616  ;;  %v641_v42 = vmul.f32 %v636_v36, %v626_v29  ;;  %v643_v43 = vmul.f32 %v636_v36, %v631_v30 }
  0xac   : > { %v619_v40 = vsel %vm618_vm1, %v615_v33, %v617_v39  ;;  %v1181_v33 = vld [vmem:[%s4107_s8 + $0x18] sm:$0xff] }
  0xad   : > { %v640_v41 = vrot.slane %v619_v40, %v3430_v7  ;;  %v661_v57 = vadd.f32 %v657_v50, %v643_v43  ;;  %v659_v59 = vadd.f32 %v655_v44, %v641_v42 }
  0xaf   : > { %v642_v46 = vmul.f32 %v640_v41, %v626_v29  ;;  %v644_v47 = vmul.f32 %v640_v41, %v631_v30  ;;  %v672_v48 = vpop.permute.xlu0 %671  ;;  %v666_v49 = vpop.permute.xlu1 %665  ;;  %v1178_v29 = vld [vmem:[%s4107_s8] sm:$0xff]  ;;  %v1180_v30 = vld [vmem:[%s4107_s8 + $0x10] sm:$0xff] }
  0xb0   : > { %v668_v52 = vsel %vm667_vm2, %v664_v38, %v666_v49  ;;  %v675_v53 = vsel %vm674_vm3, %v666_v49, %v672_v48 }
  0xb1   : > { %v687_v54 = vrot.slane %v668_v52, %v3430_v7  ;;  %v691_v55 = vrot.slane %v675_v53, %v3430_v7  ;;  %v662_v58 = vadd.f32 %v658_v51, %v644_v47  ;;  %v660_v60 = vadd.f32 %v656_v45, %v642_v46 }
  0xb2   : > { %v3530_v7 = vsel %vm594_vm6, 1.0, %v3262_v14 }
  0xb3   : > { %v692_v61 = vmul.f32 %v687_v54, %v678_v26  ;;  %v693_v62 = vmul.f32 %v691_v55, %v678_v26  ;;  %v694_v63 = vmul.f32 %v687_v54, %v682_v31  ;;  %v695_v0 = vmul.f32 %v691_v55, %v682_v31  ;;  %v705_v1 = vpop.permute.xlu1 %704  ;;  %v710_v8 = vpop.permute.xlu0 %709  ;;  %v1246_v31 = vld [vmem:[%s4109_s10] sm:$0xff] }
  0xb5   : > { %v698_v2 = vadd.f32 %v694_v63, %v661_v57  ;;  %v699_v3 = vadd.f32 %v695_v0, %v662_v58  ;;  %v696_v4 = vadd.f32 %v692_v61, %v659_v59  ;;  %v697_v5 = vadd.f32 %v693_v62, %v660_v60 }
  0xb7   : > { %v3533_v9 = vadd.f32 %v710_v8, %v698_v2  ;;  %v3535_v10 = vadd.f32 %v710_v8, %v699_v3  ;;  %v3537_v11 = vadd.f32 %v705_v1, %v696_v4  ;;  %v3539_v12 = vadd.f32 %v705_v1, %v697_v5  ;;  %v1072_v4 = vld [vmem:[%s4106_s7] sm:$0xff]  ;;  %v1073_v8 = vld [vmem:[%s4106_s7 + $0x8] sm:$0xff] }
  0xb9   : > { %v3544_v13 = vmul.f32 %v3530_v7, %v3533_v9  ;;  %v3547_v15 = vmul.f32 0.0, %v3535_v10  ;;  %v3551_v16 = vmul.f32 %v3530_v7, %v3537_v11  ;;  %v3554_v17 = vmul.f32 0.0, %v3539_v12 }
  0xba   : > { %v2810_v19 = vpack.c.bf16 %v3535_v10, %v3539_v12  ;;  %v2812_v20 = vpack.c.bf16 %v3533_v9, %v3537_v11 }
  0xbb   : > { %v3023_v21 = vpack.i.bf16 %v3547_v15, %v3554_v17  ;;  %v3013_v22 = vpack.i.bf16 %v3554_v17, %v3551_v16  ;;  %v2818_v23 = vpack.c.bf16 %v3547_v15, %v3554_v17  ;;  %v2820_v24 = vpack.c.bf16 %v3544_v13, %v3551_v16 }
  0xbc   : > { %2811 = vmatprep.subr.bf16.mxu0 %v2810_v19  ;;  %v3033_v26 = vpack.i.bf16 %v3544_v13, %v3551_v16  ;;  %v3018_v27 = vpack.i.bf16 %v3547_v15, %v3544_v13  ;;  %v1074_v16 = vld [vmem:[%s4106_s7 + $0x10] sm:$0xff]  ;;  %v716_v19 = vld [vmem:[%s4103_s4] sm:$0xff] }
  0xbd   : > { %2813 = vmatpush1.bf16.msra.mxu0 %v2812_v20  ;;  %3024 = vrot.lane.b32.xlu0 %v3023_v21, %s4137_s30  ;;  %s4140_s30 = smov 127   ;;  %v717_v20 = vld [vmem:[%s4103_s4 + $0x8] sm:$0xff] }
  0xbe   : > { %3014 = vrot.lane.b32.xlu1 %v3013_v22, %s4138_s17 }
  0xc0   : > { %2707 = vmatmul.mubr.msk.f32.vlgmr.msra.gmra.mrb[0].mxu0 %vm730_vm8, %v716_v19 }
  0xc1   : > { %3034 = vrot.lane.b32.xlu0 %v3033_v26, %s4139_s27  ;;  %807 = vmatprep.mubr.f32.mxu0 %v3262_v14  ;;  %s3265_s27 = smov 126  }
  0xc2   : > { %3019 = vrot.lane.b32.xlu1 %v3018_v27, %s4138_s17 }
  0xc4   : > { %2708 = vmatmul.mubr.msk.f32.gmra.mrb[2].mxu0 %vm730_vm8, %v717_v20 }
  0xc5   : > { %1184 = vperm.xlu0 %3010, %v1178_v29   ;;  %1346 = vmatprep.mubr.f32.mxu0 %v3262_v14 }
  0xc6   : > { %3029 = vrot.lane.b32.xlu1 %v3023_v21, %s4140_s30 }
  0xc9   : > { %1194 = vperm.xlu0 %3010, %v1180_v30  }
  0xca   : > { %3039 = vrot.lane.b32.xlu1 %v3033_v26, %s4140_s30  ;;  %s3263_s30 = smov 2  }
  0xcd   : > { %1252 = vperm.xlu0 %3010, %v1246_v31  }
  0xce   : > { %1189 = vperm.xlu1 %3012, %v1179_v32  }
  0xd2   : > { %1199 = vperm.xlu1 %3012, %v1181_v33  }
  0xd6   : > { %1257 = vperm.xlu1 %3012, %v1247_v34  }
 0x118   : > { %v3617_v62 = vpop.f32.mrb[8].mxu1 }
 0x119   : > { %v3621_v1 = vpop.f32.mrb[9].mxu1 }
 0x11c   : > { %v3623_v3 = vpop.f32.mrb[10].mxu1 }
 0x11d   : > { %v3628_v5 = vpop.f32.mrb[11].mxu1 }
 0x120   : > { %v3631_v6 = vpop.f32.mrb[12].mxu1 }
 0x121   : > { %v3637_v13 = vpop.f32.mrb[13].mxu1 }
 0x124   : > { %v3640_v15 = vpop.f32.mrb[14].mxu1 }
 0x125   : > { %v3646_v17 = vpop.f32.mrb[15].mxu1 }
 0x12f   : > { %v3025_v35 = vpop.permute.xlu0 %3024 }
 0x130   : > { %v3015_v36 = vpop.permute.xlu1 %3014  ;;  %v3026_v37 = vunpack.i.l.bf16 %v3025_v35  ;;  %v3027_v41 = vunpack.i.h.bf16 %v3025_v35 }
 0x131   : > { %v3017_v38 = vunpack.i.h.bf16 %v3015_v36  ;;  %v3016_v39 = vunpack.i.l.bf16 %v3015_v36 }
 0x133   : > { %v3035_v44 = vpop.permute.xlu0 %3034  ;;  %v1048_v45 = vsel %vm618_vm1, %v3026_v37, %v3016_v39  ;;  %v1042_v47 = vsel %vm618_vm1, %v3016_v39, %v3017_v38 }
 0x134   : > { %v3020_v40 = vpop.permute.xlu1 %3019  ;;  %v3037_v52 = vunpack.i.h.bf16 %v3035_v44  ;;  %v3036_v53 = vunpack.i.l.bf16 %v3035_v44 }
 0x135   : > { %v3022_v42 = vunpack.i.h.bf16 %v3020_v40  ;;  %v3021_v43 = vunpack.i.l.bf16 %v3020_v40 }
 0x137   : > { %v1049_v46 = vsel %vm618_vm1, %v3027_v41, %v3021_v43  ;;  %v1043_v48 = vsel %vm618_vm1, %v3021_v43, %v3022_v42 }
 0x138   : > { %v2816_v49 = vpack.c.bf16 %v1049_v46, %v1048_v45  ;;  %v3030_v50 = vpop.permute.xlu1 %3029  ;;  %v2814_v51 = vpack.c.bf16 %v1043_v48, %v1042_v47 }
 0x139   : > { %v3032_v54 = vunpack.i.h.bf16 %v3030_v50  ;;  %v3031_v55 = vunpack.i.l.bf16 %v3030_v50 }
 0x13a   : > { %2815 = vmatprep.subr.bf16.mxu1 %v2814_v51 }
 0x13b   : > { %2817 = vmatpush1.bf16.msra.mxu1 %v2816_v49  ;;  %v1070_v56 = vsel %vm674_vm3, %v3031_v55, %v3036_v53  ;;  %v1071_v57 = vsel %vm674_vm3, %v3032_v54, %v3037_v52 }
 0x13c   : > { %v3040_v58 = vpop.permute.xlu1 %3039  ;;  %2819 = vmatprep.subr.bf16.mxu1 %v2818_v23  ;;  %v2822_v61 = vpack.c.bf16 %v1071_v57, %v1070_v56 }
 0x13d   : > { %v3042_v59 = vunpack.i.h.bf16 %v3040_v58  ;;  %v3041_v60 = vunpack.i.l.bf16 %v3040_v58 }
 0x13f   : > { %v1058_v63 = vsel %vm667_vm2, %v3041_v60, %v3031_v55  ;;  %v1059_v0 = vsel %vm667_vm2, %v3042_v59, %v3032_v54  ;;  %2821 = vmatpush1.bf16.msra.mxu1 %v2820_v24 }
 0x140   : > { %v2824_v2 = vpack.c.bf16 %v1059_v0, %v1058_v63  ;;  %2823 = vmatprep.subr.bf16.mxu1 %v2822_v61 }
 0x143   : > { %2825 = vmatpush1.bf16.msra.mxu1 %v2824_v2 }
 0x144   : > { %v1185_v21 = vpop.permute.xlu0 %1184 }
 0x146   : > { %2723 = vmatmul.mubr.msk.f32.vlgmr.msra.gmra.mrb[0].mxu1 %vm1076_vm7, %v1072_v4 }
 0x147   : > { %1159 = vmatprep.mubr.f32.mxu1 %v3262_v14 }
 0x148   : > { %v1195_v37 = vpop.permute.xlu0 %1194 }
 0x14a   : > { %2724 = vmatmul.mubr.msk.f32.gmra.mrb[2].mxu1 %vm1076_vm7, %v1073_v8 }
 0x14b   : > { %1165 = vmatprep.mubr.f32.mxu1 %v3262_v14 }
 0x14c   : > { %v1253_v19 = vpop.permute.xlu0 %1252 }
 0x14d   : > { %v1190_v27 = vpop.permute.xlu1 %1189 }
 0x14e   : > { %2725 = vmatmul.mubr.msk.f32.gmra.mrb[4].mxu1 %vm1076_vm7, %v1074_v16  ;;  %v1242_v16 = vld [vmem:[%s4108_s9] sm:$0xff] }
 0x14f   : > { %1171 = vmatprep.mubr.f32.mxu1 %v3262_v14 }
 0x151   : > { %v1200_v43 = vpop.permute.xlu1 %1199 }
 0x152   : > { %2726 = vmatmul.mubr.msk.f32.gmra.mrb[6].mxu1 %vm1076_vm7, %v1075_v18  ;;  %v1243_v18 = vld [vmem:[%s4108_s9 + $0x8] sm:$0xff] }
 0x153   : > { %1880 = vmatprep.mubr.f32.mxu1 %v3262_v14 }
 0x219   : > { %v1155_v22 = vpop.f32.mrb[0].mxu1 }
 0x21a   : > { %v1202_v23 = vadd.f32 %v1185_v21, %v1155_v22  ;;  %v1157_v24 = vpop.f32.mrb[1].mxu1 }
 0x21b   : > { %v1203_v25 = vadd.f32 %v1185_v21, %v1157_v24 }
 0x21c   : > { %v2727_v26 = vmul.f32 -1.442695, %v1202_v23 }
 0x21d   : > { %v2728_v28 = vmul.f32 -1.442695, %v1203_v25  ;;  %v1161_v29 = vpop.f32.mrb[2].mxu1  ;;  %v1258_v25 = vpop.permute.xlu1 %1257 }
 0x21e   : > { %3103 = vpow2.f32 %v2727_v26  ;;  %v1204_v30 = vadd.f32 %v1190_v27, %v1161_v29  ;;  %v1163_v31 = vpop.f32.mrb[3].mxu1 }
 0x21f   : > { %3105 = vpow2.f32 %v2728_v28  ;;  %v1205_v32 = vadd.f32 %v1190_v27, %v1163_v31 }
 0x220   : > { %v2729_v33 = vmul.f32 -1.442695, %v1204_v30 }
 0x221   : > { %v2730_v34 = vmul.f32 -1.442695, %v1205_v32  ;;  %v1167_v35 = vpop.f32.mrb[4].mxu1 }
 0x222   : > { %3107 = vpow2.f32 %v2729_v33  ;;  %v1169_v36 = vpop.f32.mrb[5].mxu1  ;;  %v1206_v38 = vadd.f32 %v1195_v37, %v1167_v35  ;;  %v1244_v35 = vld [vmem:[%s4108_s9 + $0x10] sm:$0xff] }
 0x223   : > { %3109 = vpow2.f32 %v2730_v34  ;;  %v1207_v40 = vadd.f32 %v1195_v37, %v1169_v36 }
 0x224   : > { %3111 = vtanh.f32 %v1206_v38 }
 0x225   : > { %v1173_v39 = vpop.f32.mrb[6].mxu1  ;;  %3113 = vtanh.f32 %v1207_v40 }
 0x226   : > { %v1175_v41 = vpop.f32.mrb[7].mxu1  ;;  %v1208_v46 = vadd.f32 %v1200_v43, %v1173_v39  ;;  %v1245_v39 = vld [vmem:[%s4108_s9 + $0x18] sm:$0xff] }
 0x227   : > { %v1209_v48 = vadd.f32 %v1200_v43, %v1175_v41  ;;  %v2743_v41 = vld [vmem:[%s4107_s8 + $0x20] sm:$0xff]  ;;  %v2745_v43 = vld [vmem:[%s4107_s8 + $0x30] sm:$0xff] }
 0x228   : > { %v3104_v42 = vpop.eup %3103 }
 0x229   : > { %v3106_v44 = vpop.eup %3105  ;;  %v1222_v45 = vadd.f32 1.0, %v3104_v42  ;;  %v2744_v42 = vld [vmem:[%s4107_s8 + $0x28] sm:$0xff] }
 0x22a   : > { %v1223_v47 = vadd.f32 1.0, %v3106_v44  ;;  %v2746_v44 = vld [vmem:[%s4107_s8 + $0x38] sm:$0xff] }
 0x22b   : > { %3115 = vrcp.f32 %v1222_v45  ;;  %v2755_v45 = vld [vmem:[%s4109_s10 + $0x20] sm:$0xff] }
 0x22c   : > { %v3108_v49 = vpop.eup %3107  ;;  %3117 = vrcp.f32 %v1223_v47 }
 0x22d   : > { %v3110_v50 = vpop.eup %3109  ;;  %v1224_v51 = vadd.f32 1.0, %v3108_v49  ;;  %3119 = vtanh.f32 %v1208_v46  ;;  %v2756_v46 = vld [vmem:[%s4109_s10 + $0x28] sm:$0xff] }
 0x22e   : > { %v1225_v52 = vadd.f32 1.0, %v3110_v50  ;;  %3121 = vtanh.f32 %v1209_v48  ;;  %v3112_v53 = vpop.eup %3111 }
 0x22f   : > { %3123 = vrcp.f32 %v1224_v51  ;;  %v3114_v54 = vpop.eup %3113 }
 0x230   : > { %3125 = vrcp.f32 %v1225_v52 }
 0x235   : > { %v3116_v55 = vpop.eup %3115 }
 0x236   : > { %v3118_v56 = vpop.eup %3117  ;;  %v1238_v57 = vmul.f32 %v3116_v55, %v3112_v53 }
 0x237   : > { %v3120_v58 = vpop.eup %3119  ;;  %v1239_v59 = vmul.f32 %v3118_v56, %v3114_v54 }
 0x238   : > { %v3122_v60 = vpop.eup %3121 }
 0x239   : > { %v3124_v61 = vpop.eup %3123 }
 0x23a   : > { %v3126_v63 = vpop.eup %3125  ;;  %v1240_v0 = vmul.f32 %v3124_v61, %v3120_v58 }
 0x23b   : > { %v1241_v2 = vmul.f32 %v3126_v63, %v3122_v60 }
 0x23c   : > { %v2828_v4 = vpack.c.bf16 %v1240_v0, %v1238_v57 }
 0x23d   : > { %v2826_v8 = vpack.c.bf16 %v1241_v2, %v1239_v59 }
 0x23f   : > { %2827 = vmatprep.subr.bf16.mxu0 %v2826_v8 }
 0x240   : > { %2829 = vmatpush1.bf16.msra.mxu0 %v2828_v4 }
 0x243   : > { %2731 = vmatmul.mubr.msk.f32.vlgmr.msra.gmra.mrb[4].mxu0 %vm730_vm8, %v1242_v16 }
 0x244   : > { %1352 = vmatprep.mubr.f32.mxu0 %v3262_v14 }
 0x247   : > { %2732 = vmatmul.mubr.msk.f32.gmra.mrb[6].mxu0 %vm730_vm8, %v1243_v18 }
 0x248   : > { %1358 = vmatprep.mubr.f32.mxu0 %v3262_v14 }
 0x24b   : > { %2733 = vmatmul.mubr.msk.f32.gmra.mrb[0].mxu0 %vm730_vm8, %v1244_v35 }
 0x24c   : > { %1364 = vmatprep.mubr.f32.mxu0 %v3262_v14 }
 0x24f   : > { %2734 = vmatmul.mubr.msk.f32.gmra.mrb[2].mxu0 %vm730_vm8, %v1245_v39 }
 0x250   : > { %1515 = vmatprep.mubr.f32.mxu0 %v3262_v14 }
 0x316   : > { %v1348_v20 = vpop.f32.mrb[4].mxu0 }
 0x317   : > { %v1349_v21 = vadd.f32 %v1348_v20, %v1253_v19  ;;  %v1350_v22 = vpop.f32.mrb[5].mxu0 }
 0x318   : > { %v1351_v23 = vadd.f32 %v1350_v22, %v1253_v19 }
 0x319   : > { %v3676_v24 = vadd.f32 %v1349_v21, %v3537_v11 }
 0x31a   : > { %v3679_v26 = vadd.f32 %v1351_v23, %v3539_v12  ;;  %v1354_v27 = vpop.f32.mrb[6].mxu0 }
 0x31b   : > { %v3683_v28 = vmul.f32 %v3530_v7, %v3676_v24  ;;  %v1355_v29 = vadd.f32 %v1354_v27, %v1258_v25  ;;  %v1356_v30 = vpop.f32.mrb[7].mxu0 }
 0x31c   : > { %v3686_v31 = vmul.f32 0.0, %v3679_v26  ;;  %v1357_v32 = vadd.f32 %v1356_v30, %v1258_v25  ;;  %v2735_v30 = vld [vmem:[%s4106_s7 + $0x20] sm:$0xff] }
 0x31d   : > { %v3689_v33 = vadd.f32 %v1355_v29, %v3533_v9 }
 0x31e   : > { %v3692_v11 = vadd.f32 %v1357_v32, %v3535_v10  ;;  %v3043_v12 = vpack.i.bf16 %v3686_v31, %v3683_v28  ;;  %v2738_v32 = vld [vmem:[%s4106_s7 + $0x38] sm:$0xff] }
 0x31f   : > { %v3698_v34 = vmul.f32 %v3530_v7, %v3689_v33 }
 0x320   : > { %v1382_v36 = vmul.f32 0.0, %v3692_v11  ;;  %3044 = vrot.lane.b32.xlu0 %v3043_v12, %s3263_s30 }
 0x321   : > { %v2836_v9 = vpack.c.bf16 %v3698_v34, %v3683_v28  ;;  %v3058_v40 = vpack.i.bf16 %v3698_v34, %v3683_v28  ;;  %v2737_v28 = vld [vmem:[%s4106_s7 + $0x30] sm:$0xff] }
 0x322   : > { %v3048_v10 = vpack.i.bf16 %v1382_v36, %v3698_v34  ;;  %v3053_v37 = vpack.i.bf16 %v1382_v36, %v3686_v31  ;;  %v2834_v38 = vpack.c.bf16 %v1382_v36, %v3686_v31  ;;  %v2736_v31 = vld [vmem:[%s4106_s7 + $0x28] sm:$0xff] }
 0x324   : > { %3049 = vrot.lane.b32.xlu1 %v3048_v10, %s3263_s30  ;;  %3054 = vrot.lane.b32.xlu0 %v3053_v37, %s3264_s25  ;;  %s3270_s30 = smov 12  }
 0x328   : > { %3064 = vrot.lane.b32.xlu1 %v3053_v37, %s3265_s27  ;;  %3059 = vrot.lane.b32.xlu0 %v3058_v40, %s3266_s2  ;;  %s3272_s2 = smov [#allocation2]  }
 0x32c   : > { %3069 = vrot.lane.b32.xlu1 %v3058_v40, %s3265_s27  ;;  %1547 = vperm.xlu0 %3010, %v2743_v41   ;;  %s3271_s27 = smov 120  }
 0x330   : > { %1552 = vperm.xlu1 %3012, %v2744_v42   ;;  %1557 = vperm.xlu0 %3010, %v2745_v43  }
 0x334   : > { %1562 = vperm.xlu1 %3012, %v2746_v44   ;;  %1617 = vperm.xlu0 %3010, %v2755_v45  }
 0x338   : > { %1622 = vperm.xlu1 %3012, %v2756_v46  }
 0x392   : > { %v3045_v47 = vpop.permute.xlu0 %3044 }
 0x393   : > { %v3047_v48 = vunpack.i.h.bf16 %v3045_v47  ;;  %v3046_v49 = vunpack.i.l.bf16 %v3045_v47 }
 0x395   : > { %v1402_v58 = vsel %vm1401_vm9, %v3046_v49, %v3047_v48 }
 0x396   : > { %v3050_v50 = vpop.permute.xlu1 %3049  ;;  %v3055_v51 = vpop.permute.xlu0 %3054 }
 0x397   : > { %v3052_v52 = vunpack.i.h.bf16 %v3050_v50  ;;  %v3051_v53 = vunpack.i.l.bf16 %v3050_v50  ;;  %v3057_v54 = vunpack.i.h.bf16 %v3055_v51  ;;  %v3056_v55 = vunpack.i.l.bf16 %v3055_v51 }
 0x399   : > { %v1409_v56 = vsel %vm1401_vm9, %v3057_v54, %v3051_v53  ;;  %v1408_v57 = vsel %vm1401_vm9, %v3056_v55, %v3046_v49  ;;  %v1403_v59 = vsel %vm1401_vm9, %v3051_v53, %v3052_v52 }
 0x39a   : > { %v2832_v60 = vpack.c.bf16 %v1409_v56, %v1408_v57  ;;  %v3065_v61 = vpop.permute.xlu1 %3064  ;;  %v3060_v63 = vpop.permute.xlu0 %3059  ;;  %v2830_v0 = vpack.c.bf16 %v1403_v59, %v1402_v58 }
 0x39b   : > { %v3067_v2 = vunpack.i.h.bf16 %v3065_v61  ;;  %v3066_v4 = vunpack.i.l.bf16 %v3065_v61  ;;  %v3062_v8 = vunpack.i.h.bf16 %v3060_v63  ;;  %v3061_v16 = vunpack.i.l.bf16 %v3060_v63 }
 0x39c   : > { %2831 = vmatprep.subr.bf16.mxu0 %v2830_v0 }
 0x39d   : > { %2833 = vmatpush1.bf16.msra.mxu0 %v2832_v60  ;;  %v1432_v18 = vsel %vm1431_vm10, %v3066_v4, %v3061_v16  ;;  %v1433_v19 = vsel %vm1431_vm10, %v3067_v2, %v3062_v8 }
 0x39e   : > { %v3070_v20 = vpop.permute.xlu1 %3069  ;;  %2835 = vmatprep.subr.bf16.mxu0 %v2834_v38  ;;  %v2838_v23 = vpack.c.bf16 %v1433_v19, %v1432_v18 }
 0x39f   : > { %v3072_v21 = vunpack.i.h.bf16 %v3070_v20  ;;  %v3071_v22 = vunpack.i.l.bf16 %v3070_v20 }
 0x3a1   : > { %v1420_v25 = vsel %vm1418_vm11, %v3072_v21, %v3067_v2  ;;  %v1419_v27 = vsel %vm1418_vm11, %v3071_v22, %v3066_v4  ;;  %2837 = vmatpush1.bf16.msra.mxu0 %v2836_v9 }
 0x3a2   : > { %v2840_v29 = vpack.c.bf16 %v1420_v25, %v1419_v27  ;;  %2839 = vmatprep.subr.bf16.mxu0 %v2838_v23 }
 0x3a5   : > { %2841 = vmatpush1.bf16.msra.mxu0 %v2840_v29 }
 0x3a8   : > { %2739 = vmatmul.mubr.msk.f32.vlgmr.msra.gmra.mrb[8].mxu0 %vm1076_vm7, %v2735_v30  ;;  %v2751_v30 = vld [vmem:[%s4108_s9 + $0x20] sm:$0xff] }
 0x3a9   : > { %1521 = vmatprep.mubr.f32.mxu0 %v3262_v14 }
 0x3ab   : > { %v1548_v36 = vpop.permute.xlu0 %1547 }
 0x3ac   : > { %2740 = vmatmul.mubr.msk.f32.gmra.mrb[10].mxu0 %vm1076_vm7, %v2736_v31  ;;  %v2752_v31 = vld [vmem:[%s4108_s9 + $0x28] sm:$0xff] }
 0x3ad   : > { %1527 = vmatprep.mubr.f32.mxu0 %v3262_v14 }
 0x3af   : > { %v1553_v42 = vpop.permute.xlu1 %1552  ;;  %v1558_v51 = vpop.permute.xlu0 %1557 }
 0x3b0   : > { %2741 = vmatmul.mubr.msk.f32.gmra.mrb[12].mxu0 %vm1076_vm7, %v2737_v28 }
 0x3b1   : > { %1533 = vmatprep.mubr.f32.mxu0 %v3262_v14 }
 0x3b3   : > { %v1563_v57 = vpop.permute.xlu1 %1562  ;;  %v1618_v28 = vpop.permute.xlu0 %1617 }
 0x3b4   : > { %2742 = vmatmul.mubr.msk.f32.gmra.mrb[14].mxu0 %vm1076_vm7, %v2738_v32 }
 0x3b5   : > { %1711 = vmatprep.mubr.f32.mxu0 %v3262_v14 }
 0x47b   : > { %v1517_v12 = vpop.f32.mrb[8].mxu0 }
 0x47c   : > { %v1518_v34 = vadd.f32 %v1517_v12, %v3617_v62  ;;  %v1519_v35 = vpop.f32.mrb[9].mxu0 }
 0x47d   : > { %v1520_v9 = vadd.f32 %v1519_v35, %v3621_v1 }
 0x47e   : > { %v1565_v10 = vadd.f32 %v1548_v36, %v1518_v34 }
 0x47f   : > { %v1566_v37 = vadd.f32 %v1548_v36, %v1520_v9  ;;  %v1523_v38 = vpop.f32.mrb[10].mxu0  ;;  %v1623_v9 = vpop.permute.xlu1 %1622 }
 0x480   : > { %v2747_v39 = vmul.f32 -1.442695, %v1565_v10  ;;  %v1524_v40 = vadd.f32 %v1523_v38, %v3623_v3  ;;  %v1525_v41 = vpop.f32.mrb[11].mxu0 }
 0x481   : > { %v2748_v43 = vmul.f32 -1.442695, %v1566_v37  ;;  %v1526_v44 = vadd.f32 %v1525_v41, %v3628_v5 }
 0x482   : > { %3127 = vpow2.f32 %v2747_v39  ;;  %v1567_v45 = vadd.f32 %v1553_v42, %v1524_v40 }
 0x483   : > { %3129 = vpow2.f32 %v2748_v43  ;;  %v1568_v46 = vadd.f32 %v1553_v42, %v1526_v44  ;;  %v1529_v62 = vpop.f32.mrb[12].mxu0 }
 0x484   : > { %v2749_v47 = vmul.f32 -1.442695, %v1567_v45  ;;  %v1530_v48 = vadd.f32 %v1529_v62, %v3631_v6  ;;  %v1531_v1 = vpop.f32.mrb[13].mxu0 }
 0x485   : > { %v2750_v49 = vmul.f32 -1.442695, %v1568_v46  ;;  %v1532_v50 = vadd.f32 %v1531_v1, %v3637_v13  ;;  %v2773_v1 = vld [vmem:[%s4107_s8 + $0x50] sm:$0xff] }
 0x486   : > { %3131 = vpow2.f32 %v2749_v47  ;;  %v1569_v5 = vadd.f32 %v1558_v51, %v1530_v48  ;;  %v2771_v47 = vld [vmem:[%s4107_s8 + $0x40] sm:$0xff]  ;;  %v2772_v48 = vld [vmem:[%s4107_s8 + $0x48] sm:$0xff] }
 0x487   : > { %3133 = vpow2.f32 %v2750_v49  ;;  %v1535_v3 = vpop.f32.mrb[14].mxu0  ;;  %v1570_v55 = vadd.f32 %v1558_v51, %v1532_v50  ;;  %v2774_v49 = vld [vmem:[%s4107_s8 + $0x58] sm:$0xff]  ;;  %v2783_v50 = vld [vmem:[%s4109_s10 + $0x40] sm:$0xff] }
 0x488   : > { %v1536_v52 = vadd.f32 %v1535_v3, %v3640_v15  ;;  %v1537_v53 = vpop.f32.mrb[15].mxu0  ;;  %3135 = vtanh.f32 %v1569_v5  ;;  %v2784_v3 = vld [vmem:[%s4109_s10 + $0x48] sm:$0xff]  ;;  %v718_v51 = vld [vmem:[%s4104_s5] sm:$0xff]  ;;  %v1249_v5 = vld [vmem:[%s4109_s10 + $0x18] sm:$0xff] }
 0x489   : > { %v1538_v54 = vadd.f32 %v1537_v53, %v3646_v17  ;;  %3137 = vtanh.f32 %v1570_v55  ;;  %v1248_v53 = vld [vmem:[%s4109_s10 + $0x10] sm:$0xff]  ;;  %v2758_v55 = vld [vmem:[%s4109_s10 + $0x38] sm:$0xff] }
 0x48a   : > { %v1571_v6 = vadd.f32 %v1563_v57, %v1536_v52  ;;  %v719_v52 = vld [vmem:[%s4104_s5 + $0x8] sm:$0xff] }
 0x48b   : > { %v1572_v13 = vadd.f32 %v1563_v57, %v1538_v54  ;;  %v2757_v54 = vld [vmem:[%s4109_s10 + $0x30] sm:$0xff]  ;;  %v2786_v57 = vld [vmem:[%s4109_s10 + $0x58] sm:$0xff] }
 0x48c   : > { %v3128_v56 = vpop.eup %3127 }
 0x48d   : > { %v3130_v58 = vpop.eup %3129  ;;  %v1585_v59 = vadd.f32 1.0, %v3128_v56  ;;  %v2785_v56 = vld [vmem:[%s4109_s10 + $0x50] sm:$0xff] }
 0x48e   : > { %v1586_v60 = vadd.f32 1.0, %v3130_v58  ;;  %v2295_v58 = vld [vmem:[%s4112_s13] sm:$0xff] }
 0x48f   : > { %3139 = vrcp.f32 %v1585_v59  ;;  %v2296_v59 = vld [vmem:[%s4112_s13 + $0x8] sm:$0xff] }
 0x490   : > { %v3132_v61 = vpop.eup %3131  ;;  %3141 = vrcp.f32 %v1586_v60  ;;  %v2324_v60 = vld [vmem:[%s4114_s15 + $0x8] sm:$0xff] }
 0x491   : > { %v3134_v63 = vpop.eup %3133  ;;  %v1587_v0 = vadd.f32 1.0, %v3132_v61  ;;  %3143 = vtanh.f32 %v1571_v6  ;;  %v2323_v6 = vld [vmem:[%s4114_s15] sm:$0xff]  ;;  %v2326_v61 = vld [vmem:[%s4114_s15 + $0x18] sm:$0xff] }
 0x492   : > { %v1588_v15 = vadd.f32 1.0, %v3134_v63  ;;  %3145 = vtanh.f32 %v1572_v13  ;;  %v3136_v17 = vpop.eup %3135  ;;  %v2325_v13 = vld [vmem:[%s4114_s15 + $0x10] sm:$0xff]  ;;  %v2327_v63 = vld [vmem:[%s4114_s15 + $0x20] sm:$0xff] }
 0x493   : > { %3147 = vrcp.f32 %v1587_v0  ;;  %v3138_v2 = vpop.eup %3137  ;;  %v2328_v0 = vld [vmem:[%s4114_s15 + $0x28] sm:$0xff] }
 0x494   : > { %3149 = vrcp.f32 %v1588_v15  ;;  %v2329_v15 = vld [vmem:[%s4114_s15 + $0x30] sm:$0xff] }
 0x499   : > { %v3140_v4 = vpop.eup %3139 }
 0x49a   : > { %v3142_v8 = vpop.eup %3141  ;;  %v1601_v16 = vmul.f32 %v3140_v4, %v3136_v17  ;;  %v2330_v17 = vld [vmem:[%s4114_s15 + $0x38] sm:$0xff] }
 0x49b   : > { %v3144_v18 = vpop.eup %3143  ;;  %v1602_v19 = vmul.f32 %v3142_v8, %v3138_v2 }
 0x49c   : > { %v3146_v20 = vpop.eup %3145 }
 0x49d   : > { %v3148_v21 = vpop.eup %3147 }
 0x49e   : > { %v3150_v22 = vpop.eup %3149  ;;  %v1603_v23 = vmul.f32 %v3148_v21, %v3144_v18 }
 0x49f   : > { %v1604_v25 = vmul.f32 %v3150_v22, %v3146_v20 }
 0x4a0   : > { %v2844_v27 = vpack.c.bf16 %v1603_v23, %v1601_v16 }
 0x4a1   : > { %v2842_v29 = vpack.c.bf16 %v1604_v25, %v1602_v19 }
 0x4a3   : > { %2843 = vmatprep.subr.bf16.mxu0 %v2842_v29 }
 0x4a4   : > { %2845 = vmatpush1.bf16.msra.mxu0 %v2844_v27 }
 0x4a7   : > { %2759 = vmatmul.mubr.msk.f32.vlgmr.msra.gmra.mrb[16].mxu0 %vm730_vm8, %v2751_v30 }
 0x4a8   : > { %1717 = vmatprep.mubr.f32.mxu0 %v3262_v14 }
 0x4ab   : > { %2760 = vmatmul.mubr.msk.f32.gmra.mrb[18].mxu0 %vm730_vm8, %v2752_v31 }
 0x4ac   : > { %1723 = vmatprep.mubr.f32.mxu0 %v3262_v14 }
 0x57a   : > { %v1713_v32 = vpop.f32.mrb[16].mxu0 }
 0x57b   : > { %v1714_v12 = vadd.f32 %v1713_v32, %v1618_v28  ;;  %v1715_v34 = vpop.f32.mrb[17].mxu0 }
 0x57c   : > { %v1716_v35 = vadd.f32 %v1715_v34, %v1618_v28 }
 0x57d   : > { %v3778_v36 = vadd.f32 %v1714_v12, %v3676_v24 }
 0x57e   : > { %v3781_v10 = vadd.f32 %v1716_v35, %v3679_v26  ;;  %v1719_v37 = vpop.f32.mrb[18].mxu0 }
 0x57f   : > { %v3785_v38 = vmul.f32 %v3530_v7, %v3778_v36  ;;  %v1720_v39 = vadd.f32 %v1719_v37, %v1623_v9  ;;  %v1721_v40 = vpop.f32.mrb[19].mxu0 }
 0x580   : > { %v3788_v41 = vmul.f32 0.0, %v3781_v10  ;;  %v1722_v42 = vadd.f32 %v1721_v40, %v1623_v9 }
 0x581   : > { %v3791_v43 = vadd.f32 %v1720_v39, %v3689_v33 }
 0x582   : > { %v3794_v24 = vadd.f32 %v1722_v42, %v3692_v11  ;;  %v3073_v26 = vpack.i.bf16 %v3788_v41, %v3785_v38 }
 0x583   : > { %v3800_v44 = vmul.f32 %v3530_v7, %v3791_v43 }
 0x584   : > { %v3803_v45 = vmul.f32 0.0, %v3794_v24  ;;  %3074 = vrot.lane.b32.xlu0 %v3073_v26, %s3267_s3 }
 0x585   : > { %v2852_v46 = vpack.c.bf16 %v3800_v44, %v3785_v38  ;;  %v3088_v7 = vpack.i.bf16 %v3800_v44, %v3785_v38  ;;  %v2765_v38 = vld [vmem:[%s4106_s7 + $0x50] sm:$0xff] }
 0x586   : > { %v3078_v33 = vpack.i.bf16 %v3803_v45, %v3800_v44  ;;  %v3083_v11 = vpack.i.bf16 %v3803_v45, %v3788_v41  ;;  %v2850_v62 = vpack.c.bf16 %v3803_v45, %v3788_v41  ;;  %v2764_v41 = vld [vmem:[%s4106_s7 + $0x48] sm:$0xff]  ;;  %v2766_v44 = vld [vmem:[%s4106_s7 + $0x58] sm:$0xff]  ;;  %v2753_v45 = vld [vmem:[%s4108_s9 + $0x30] sm:$0xff] }
 0x587   : > { %2761 = vmatmul.mubr.msk.f32.gmra.mrb[0].mxu0 %vm730_vm8, %v2753_v45 }
 0x588   : > { %3079 = vrot.lane.b32.xlu1 %v3078_v33, %s3267_s3  ;;  %3084 = vrot.lane.b32.xlu0 %v3083_v11, %s3268_s29  ;;  %s4025_s3 = scalar_lea.vmem [#allocation2], %s2702_s1  ;;  %s2809_s29 = sshll.u32 %s3245_s24, 10 }
 0x589   : > { %1729 = vmatprep.mubr.f32.mxu0 %v3262_v14  ;;  %s4045_s17 = scalar_lea.hbm %s4115_s16, %s2809_s29  ;;  %s4053_s24 = scalar_lea.sflag [#allocation3], %s559_s28 }
 0x58c   : > { %3094 = vrot.lane.b32.xlu1 %v3083_v11, %s3269_s19  ;;  %3089 = vrot.lane.b32.xlu0 %v3088_v7, %s3270_s30  ;;  %s2597_s30 = sshll.u32 %s4025_s3, 4  ;;  %s4047_s30 = int_to_ptr.vmem [resolvable:$true] %s2597_s30 }
 0x58d   : > { %s3175_s25 = scalar_lea.vmem %s4047_s30, 1024 }
 0x58e   : > { %p3176_p12 = scmp.ne.s32.totalorder %s4047_s30, %s3175_s25 }
 0x590   : > { %3099 = vrot.lane.b32.xlu1 %v3088_v7, %s3269_s19  ;;  %1912 = vperm.xlu0 %3010, %v2771_v47   ;;  %p3177_p13 = pnand %p3176_p12, %p3400_p4 }
 0x592   : > { %p3178_p0 = pneg %p3177_p13 }
 0x594   : > { %1917 = vperm.xlu1 %3012, %v2772_v48   ;;  %1922 = vperm.xlu0 %3010, %v2773_v1   ;;  %v2763_v48 = vld [vmem:[%s4106_s7 + $0x40] sm:$0xff] }
 0x598   : > { %1927 = vperm.xlu1 %3012, %v2774_v49   ;;  %1982 = vperm.xlu0 %3010, %v2783_v50  }
 0x59c   : > { %1987 = vperm.xlu1 %3012, %v2784_v3   ;;  %722 = vperm.xlu0 %3010, %v718_v51  }
 0x5a0   : > { %727 = vperm.xlu1 %3012, %v719_v52   ;;  %1262 = vperm.xlu0 %3010, %v1248_v53  }
 0x5a4   : > { %1267 = vperm.xlu1 %3012, %v1249_v5   ;;  %1627 = vperm.xlu0 %3010, %v2757_v54  }
 0x5a8   : > { %1632 = vperm.xlu1 %3012, %v2758_v55   ;;  %1992 = vperm.xlu0 %3010, %v2785_v56  }
 0x5ac   : > { %1997 = vperm.xlu1 %3012, %v2786_v57   ;;  %2299 = vperm.xlu0 %3010, %v2295_v58  }
 0x5b0   : > { %2304 = vperm.xlu1 %3012, %v2296_v59   ;;  %2333 = vperm.xlu0 %3010, %v2323_v6  }
 0x5b4   : > { %2338 = vperm.xlu1 %3012, %v2324_v60   ;;  %2343 = vperm.xlu0 %3010, %v2325_v13  }
 0x5b8   : > { %2348 = vperm.xlu1 %3012, %v2326_v61   ;;  %2353 = vperm.xlu0 %3010, %v2327_v63  }
 0x5bc   : > { %2358 = vperm.xlu1 %3012, %v2328_v0   ;;  %2363 = vperm.xlu0 %3010, %v2329_v15  }
 0x5c0   : > { %2368 = vperm.xlu1 %3012, %v2330_v17  }
 0x5f6   : > { %v3075_v2 = vpop.permute.xlu0 %3074 }
 0x5f7   : > { %v3077_v4 = vunpack.i.h.bf16 %v3075_v2  ;;  %v3076_v8 = vunpack.i.l.bf16 %v3075_v2 }
 0x5f9   : > { %v1767_v27 = vsel %vm1766_vm12, %v3076_v8, %v3077_v4 }
 0x5fa   : > { %v3080_v16 = vpop.permute.xlu1 %3079  ;;  %v3085_v18 = vpop.permute.xlu0 %3084 }
 0x5fb   : > { %v3082_v19 = vunpack.i.h.bf16 %v3080_v16  ;;  %v3081_v20 = vunpack.i.l.bf16 %v3080_v16  ;;  %v3087_v21 = vunpack.i.h.bf16 %v3085_v18  ;;  %v3086_v22 = vunpack.i.l.bf16 %v3085_v18 }
 0x5fd   : > { %v1774_v23 = vsel %vm1766_vm12, %v3087_v21, %v3081_v20  ;;  %v1773_v25 = vsel %vm1766_vm12, %v3086_v22, %v3076_v8  ;;  %v1768_v29 = vsel %vm1766_vm12, %v3081_v20, %v3082_v19 }
 0x5fe   : > { %v2848_v30 = vpack.c.bf16 %v1774_v23, %v1773_v25  ;;  %v3095_v31 = vpop.permute.xlu1 %3094  ;;  %v3090_v28 = vpop.permute.xlu0 %3089  ;;  %v2846_v32 = vpack.c.bf16 %v1768_v29, %v1767_v27 }
 0x5ff   : > { %v3097_v12 = vunpack.i.h.bf16 %v3095_v31  ;;  %v3096_v34 = vunpack.i.l.bf16 %v3095_v31  ;;  %v3092_v35 = vunpack.i.h.bf16 %v3090_v28  ;;  %v3091_v9 = vunpack.i.l.bf16 %v3090_v28 }
 0x600   : > { %2847 = vmatprep.subr.bf16.mxu1 %v2846_v32 }
 0x601   : > { %2849 = vmatpush1.bf16.msra.mxu1 %v2848_v30  ;;  %v1797_v37 = vsel %vm1796_vm13, %v3096_v34, %v3091_v9  ;;  %v1798_v39 = vsel %vm1796_vm13, %v3097_v12, %v3092_v35 }
 0x602   : > { %v3100_v40 = vpop.permute.xlu1 %3099  ;;  %2851 = vmatprep.subr.bf16.mxu1 %v2850_v62  ;;  %v2854_v33 = vpack.c.bf16 %v1798_v39, %v1797_v37 }
 0x603   : > { %v3102_v42 = vunpack.i.h.bf16 %v3100_v40  ;;  %v3101_v26 = vunpack.i.l.bf16 %v3100_v40  ;;  %v2779_v40 = vld [vmem:[%s4108_s9 + $0x40] sm:$0xff] }
 0x605   : > { %v1785_v11 = vsel %vm1783_vm14, %v3102_v42, %v3097_v12  ;;  %v1784_v7 = vsel %vm1783_vm14, %v3101_v26, %v3096_v34  ;;  %2853 = vmatpush1.bf16.msra.mxu1 %v2852_v46  ;;  %v2754_v46 = vld [vmem:[%s4108_s9 + $0x38] sm:$0xff]  ;;  %v2780_v42 = vld [vmem:[%s4108_s9 + $0x48] sm:$0xff]  ;;  %v2781_v26 = vld [vmem:[%s4108_s9 + $0x50] sm:$0xff] }
 0x606   : > { %v2856_v47 = vpack.c.bf16 %v1785_v11, %v1784_v7  ;;  %2855 = vmatprep.subr.bf16.mxu1 %v2854_v33  ;;  %2762 = vmatmul.mubr.msk.f32.gmra.mrb[2].mxu0 %vm730_vm8, %v2754_v46  ;;  %v2782_v33 = vld [vmem:[%s4108_s9 + $0x58] sm:$0xff] }
 0x607   : > { %2076 = vmatprep.mubr.f32.mxu0 %v3262_v14 }
 0x609   : > { %2857 = vmatpush1.bf16.msra.mxu1 %v2856_v47 }
 0x60c   : > { %2767 = vmatmul.mubr.msk.f32.vlgmr.msra.gmra.mrb[16].mxu1 %vm1076_vm7, %v2763_v48 }
 0x60d   : > { %1886 = vmatprep.mubr.f32.mxu1 %v3262_v14 }
 0x60f   : > { %v1913_v62 = vpop.permute.xlu0 %1912 }
 0x610   : > { %2768 = vmatmul.mubr.msk.f32.gmra.mrb[18].mxu1 %vm1076_vm7, %v2764_v41 }
 0x611   : > { %1892 = vmatprep.mubr.f32.mxu1 %v3262_v14 }
 0x613   : > { %v1918_v52 = vpop.permute.xlu1 %1917  ;;  %v1923_v60 = vpop.permute.xlu0 %1922 }
 0x614   : > { %2769 = vmatmul.mubr.msk.f32.gmra.mrb[20].mxu1 %vm1076_vm7, %v2765_v38 }
 0x615   : > { %1898 = vmatprep.mubr.f32.mxu1 %v3262_v14 }
 0x617   : > { %v1928_v17 = vpop.permute.xlu1 %1927  ;;  %v1983_v11 = vpop.permute.xlu0 %1982 }
 0x618   : > { %2770 = vmatmul.mubr.msk.f32.gmra.mrb[22].mxu1 %vm1076_vm7, %v2766_v44 }
 0x619   : > { %2195 = vmatprep.mubr.f32.mxu1 %v3262_v14 }
 0x61b   : > { %v1988_v7 = vpop.permute.xlu1 %1987  ;;  %v723_v47 = vpop.permute.xlu0 %722 }
 0x61f   : > { %v728_v48 = vpop.permute.xlu1 %727  ;;  %v1263_v41 = vpop.permute.xlu0 %1262 }
 0x623   : > { %v1268_v38 = vpop.permute.xlu1 %1267  ;;  %v1628_v44 = vpop.permute.xlu0 %1627 }
 0x6df   : > { %v1882_v1 = vpop.f32.mrb[16].mxu1 }
 0x6e0   : > { %v1930_v49 = vadd.f32 %v1913_v62, %v1882_v1  ;;  %v1884_v50 = vpop.f32.mrb[17].mxu1  ;;  %v1633_v1 = vpop.permute.xlu1 %1632 }
 0x6e1   : > { %v1931_v3 = vadd.f32 %v1913_v62, %v1884_v50  ;;  %v2874_v50 = vadd.f32 %v1263_v41, %v723_v47 }
 0x6e2   : > { %v2775_v51 = vmul.f32 -1.442695, %v1930_v49 }
 0x6e3   : > { %v2776_v53 = vmul.f32 -1.442695, %v1931_v3  ;;  %v1888_v5 = vpop.f32.mrb[18].mxu1  ;;  %v1993_v3 = vpop.permute.xlu0 %1992 }
 0x6e4   : > { %3151 = vpow2.f32 %v2775_v51  ;;  %v1932_v54 = vadd.f32 %v1918_v52, %v1888_v5  ;;  %v1890_v55 = vpop.f32.mrb[19].mxu1 }
 0x6e5   : > { %3153 = vpow2.f32 %v2776_v53  ;;  %v1933_v56 = vadd.f32 %v1918_v52, %v1890_v55  ;;  %v2875_v52 = vadd.f32 %v2874_v50, %v1628_v44  ;;  %v2318_v50 = vld [vmem:[%s4113_s14 + $0x18] sm:$0xff] }
 0x6e6   : > { %v2777_v57 = vmul.f32 -1.442695, %v1932_v54 }
 0x6e7   : > { %v2778_v58 = vmul.f32 -1.442695, %v1933_v56  ;;  %v1894_v59 = vpop.f32.mrb[20].mxu1 }
 0x6e8   : > { %3155 = vpow2.f32 %v2777_v57  ;;  %v1896_v6 = vpop.f32.mrb[21].mxu1  ;;  %v1934_v13 = vadd.f32 %v1923_v60, %v1894_v59  ;;  %v2882_v57 = vadd.f32 %v1268_v38, %v728_v48 }
 0x6e9   : > { %3157 = vpow2.f32 %v2778_v58  ;;  %v1935_v63 = vadd.f32 %v1923_v60, %v1896_v6  ;;  %v2876_v58 = vadd.f32 %v2875_v52, %v1993_v3  ;;  %v1998_v6 = vpop.permute.xlu1 %1997  ;;  %v2319_v3 = vld [vmem:[%s4113_s14 + $0x20] sm:$0xff]  ;;  %v2321_v52 = vld [vmem:[%s4113_s14 + $0x30] sm:$0xff] }
 0x6ea   : > { %3159 = vtanh.f32 %v1934_v13 }
 0x6eb   : > { %v1900_v61 = vpop.f32.mrb[22].mxu1  ;;  %3161 = vtanh.f32 %v1935_v63 }
 0x6ec   : > { %v1902_v0 = vpop.f32.mrb[23].mxu1  ;;  %v1936_v8 = vadd.f32 %v1928_v17, %v1900_v61  ;;  %v2883_v61 = vadd.f32 %v2882_v57, %v1633_v1  ;;  %v2316_v1 = vld [vmem:[%s4113_s14 + $0x8] sm:$0xff] }
 0x6ed   : > { %v1937_v18 = vadd.f32 %v1928_v17, %v1902_v0 }
 0x6ee   : > { %v3152_v15 = vpop.eup %3151 }
 0x6ef   : > { %v3154_v2 = vpop.eup %3153  ;;  %v1950_v4 = vadd.f32 1.0, %v3152_v15 }
 0x6f0   : > { %v1951_v16 = vadd.f32 1.0, %v3154_v2 }
 0x6f1   : > { %3163 = vrcp.f32 %v1950_v4 }
 0x6f2   : > { %v3156_v19 = vpop.eup %3155  ;;  %3165 = vrcp.f32 %v1951_v16 }
 0x6f3   : > { %v3158_v20 = vpop.eup %3157  ;;  %v1952_v21 = vadd.f32 1.0, %v3156_v19  ;;  %3167 = vtanh.f32 %v1936_v8  ;;  %v2884_v8 = vadd.f32 %v2883_v61, %v1998_v6 }
 0x6f4   : > { %v1953_v22 = vadd.f32 1.0, %v3158_v20  ;;  %3169 = vtanh.f32 %v1937_v18  ;;  %v3160_v23 = vpop.eup %3159 }
 0x6f5   : > { %3171 = vrcp.f32 %v1952_v21  ;;  %v3162_v25 = vpop.eup %3161 }
 0x6f6   : > { %3173 = vrcp.f32 %v1953_v22 }
 0x6fb   : > { %v3164_v27 = vpop.eup %3163 }
 0x6fc   : > { %v3166_v29 = vpop.eup %3165  ;;  %v1966_v30 = vmul.f32 %v3164_v27, %v3160_v23  ;;  %v2119_v23 = vld [vmem:[%s4111_s12] sm:$0xff] }
 0x6fd   : > { %v3168_v31 = vpop.eup %3167  ;;  %v1967_v28 = vmul.f32 %v3166_v29, %v3162_v25 }
 0x6fe   : > { %v3170_v32 = vpop.eup %3169 }
 0x6ff   : > { %v3172_v12 = vpop.eup %3171 }
 0x700   : > { %v3174_v34 = vpop.eup %3173  ;;  %v1968_v35 = vmul.f32 %v3172_v12, %v3168_v31 }
 0x701   : > { %v1969_v9 = vmul.f32 %v3174_v34, %v3170_v32  ;;  %v2120_v32 = vld [vmem:[%s4111_s12 + $0x8] sm:$0xff]  ;;  %v2113_v34 = vld [vmem:[%s4110_s11] sm:$0xff] }
 0x702   : > { %v2860_v37 = vpack.c.bf16 %v1968_v35, %v1966_v30  ;;  %v2114_v35 = vld [vmem:[%s4110_s11 + $0x8] sm:$0xff] }
 0x703   : > { %v2858_v39 = vpack.c.bf16 %v1969_v9, %v1967_v28 }
 0x705   : > { %2859 = vmatprep.subr.bf16.mxu0 %v2858_v39  ;;  %v2300_v39 = vpop.permute.xlu0 %2299 }
 0x706   : > { %2861 = vmatpush1.bf16.msra.mxu0 %v2860_v37 }
 0x709   : > { %2787 = vmatmul.mubr.msk.f32.vlgmr.msra.gmra.mrb[20].mxu0 %vm730_vm8, %v2779_v40 }
 0x70a   : > { %2082 = vmatprep.mubr.f32.mxu0 %v3262_v14 }
 0x70d   : > { %2788 = vmatmul.mubr.msk.f32.gmra.mrb[22].mxu0 %vm730_vm8, %v2780_v42  ;;  %v2305_v42 = vpop.permute.xlu1 %2304 }
 0x70e   : > { %2088 = vmatprep.mubr.f32.mxu0 %v3262_v14 }
 0x711   : > { %2789 = vmatmul.mubr.msk.f32.gmra.mrb[0].mxu0 %vm730_vm8, %v2781_v26 }
 0x712   : > { %2094 = vmatprep.mubr.f32.mxu0 %v3262_v14 }
 0x715   : > { %2790 = vmatmul.mubr.msk.f32.gmra.mrb[2].mxu0 %vm730_vm8, %v2782_v33 }
 0x716   : > { %2459 = vmatprep.mubr.f32.mxu0 %v3262_v14 }
 0x7dc   : > { %v2078_v45 = vpop.f32.mrb[20].mxu0 }
 0x7dd   : > { %v2079_v46 = vadd.f32 %v2078_v45, %v1983_v11  ;;  %v2080_v62 = vpop.f32.mrb[21].mxu0 }
 0x7de   : > { %v2081_v49 = vadd.f32 %v2080_v62, %v1983_v11  ;;  %v2315_v62 = vld [vmem:[%s4113_s14] sm:$0xff] }
 0x7df   : > { %v2101_v53 = vadd.f32 %v2079_v46, %v3778_v36 }
 0x7e0   : > { %v2084_v51 = vpop.f32.mrb[22].mxu0  ;;  %v2102_v55 = vadd.f32 %v2081_v49, %v3781_v10  ;;  %v2317_v49 = vld [vmem:[%s4113_s14 + $0x10] sm:$0xff] }
 0x7e1   : > { %v2085_v5 = vadd.f32 %v2084_v51, %v1988_v7  ;;  %v2086_v54 = vpop.f32.mrb[23].mxu0  ;;  %v2121_v63 = vmax.f32 %v2101_v53, 0.0  ;;  %v2320_v51 = vld [vmem:[%s4113_s14 + $0x28] sm:$0xff] }
 0x7e2   : > { %v2087_v56 = vadd.f32 %v2086_v54, %v1988_v7  ;;  %v2122_v2 = vmax.f32 %v2102_v55, 0.0 }
 0x7e3   : > { %v2103_v59 = vadd.f32 %v2085_v5, %v3791_v43  ;;  %v2334_v5 = vpop.permute.xlu0 %2333 }
 0x7e4   : > { %v2104_v60 = vadd.f32 %v2087_v56, %v3794_v24  ;;  %v2090_v13 = vpop.f32.mrb[0].mxu0 }
 0x7e5   : > { %v2123_v0 = vmax.f32 %v2103_v59, 0.0  ;;  %v2877_v15 = vadd.f32 %v2876_v58, %v2090_v13  ;;  %v2092_v17 = vpop.f32.mrb[1].mxu0 }
 0x7e6   : > { %v2124_v36 = vmax.f32 %v2104_v60, 0.0  ;;  %v2881_v4 = vadd.f32 %v2876_v58, %v2092_v17  ;;  %v2339_v58 = vpop.permute.xlu1 %2338 }
 0x7e7   : > { %v2864_v16 = vpack.c.bf16 %v2123_v0, %v2121_v63  ;;  %v2109_v10 = vadd.f32 %v2877_v15, %v2101_v53  ;;  %v2322_v53 = vld [vmem:[%s4113_s14 + $0x38] sm:$0xff]  ;;  %v2344_v13 = vpop.permute.xlu0 %2343 }
 0x7e8   : > { %v2110_v18 = vadd.f32 %v2881_v4, %v2102_v55  ;;  %v2096_v19 = vpop.f32.mrb[2].mxu0  ;;  %v2862_v20 = vpack.c.bf16 %v2124_v36, %v2122_v2 }
 0x7e9   : > { %v2885_v21 = vadd.f32 %v2884_v8, %v2096_v19  ;;  %v2098_v43 = vpop.f32.mrb[3].mxu0  ;;  %v2115_v27 = vmax.f32 %v2109_v10, 0.0 }
 0x7ea   : > { %v2889_v22 = vadd.f32 %v2884_v8, %v2098_v43  ;;  %2863 = vmatprep.subr.bf16.mxu1 %v2862_v20  ;;  %v2116_v30 = vmax.f32 %v2110_v18, 0.0  ;;  %v2349_v17 = vpop.permute.xlu1 %2348 }
 0x7eb   : > { %v2111_v24 = vadd.f32 %v2885_v21, %v2103_v59  ;;  %2865 = vmatpush1.bf16.msra.mxu1 %v2864_v16  ;;  %v2354_v16 = vpop.permute.xlu0 %2353 }
 0x7ec   : > { %v2112_v25 = vadd.f32 %v2889_v22, %v2104_v60 }
 0x7ed   : > { %v2117_v29 = vmax.f32 %v2111_v24, 0.0 }
 0x7ee   : > { %v2118_v31 = vmax.f32 %v2112_v25, 0.0  ;;  %2791 = vmatmul.mubr.msk.f32.vlgmr.msra.gmra.mrb[24].mxu1 %vm730_vm8, %v2119_v23  ;;  %v2359_v21 = vpop.permute.xlu1 %2358 }
 0x7ef   : > { %v2868_v28 = vpack.c.bf16 %v2117_v29, %v2115_v27  ;;  %2201 = vmatprep.mubr.f32.mxu1 %v3262_v14  ;;  %v2364_v25 = vpop.permute.xlu0 %2363 }
 0x7f0   : > { %v2866_v12 = vpack.c.bf16 %v2118_v31, %v2116_v30 }
 0x7f2   : > { %2792 = vmatmul.mubr.msk.f32.gmra.mrb[26].mxu1 %vm730_vm8, %v2120_v32  ;;  %2867 = vmatprep.subr.bf16.mxu1 %v2866_v12 }
 0x7f3   : > { %2869 = vmatpush1.bf16.msra.mxu1 %v2868_v28  ;;  %2278 = vmatprep.mubr.f32.mxu1 %v3262_v14  ;;  %v2369_v28 = vpop.permute.xlu1 %2368 }
 0x7f6   : > { %2793 = vmatmul.mubr.msk.f32.vlgmr.msra.gmra.mrb[24].mxu1 %vm730_vm8, %v2113_v34 }
 0x7f7   : > { %2284 = vmatprep.mubr.f32.mxu1 %v3262_v14 }
 0x7fa   : > { %2794 = vmatmul.mubr.msk.f32.gmra.mrb[26].mxu1 %vm730_vm8, %v2114_v35 }
 0x8c9   : > { %v2280_v9 = vpop.f32.mrb[24].mxu1 }
 0x8ca   : > { %v2282_v37 = vpop.f32.mrb[25].mxu1  ;;  %v2307_v40 = vadd.f32 %v2300_v39, %v2280_v9 }
 0x8cb   : > { %v2308_v26 = vadd.f32 %v2300_v39, %v2282_v37 }
 0x8cc   : > { %v2311_v48 = vmax.f32 %v2307_v40, 0.0 }
 0x8cd   : > { %v2286_v33 = vpop.f32.mrb[26].mxu1  ;;  %v2312_v38 = vmax.f32 %v2308_v26, 0.0 }
 0x8ce   : > { %v2309_v11 = vadd.f32 %v2305_v42, %v2286_v33  ;;  %v2288_v7 = vpop.f32.mrb[27].mxu1 }
 0x8cf   : > { %v2310_v47 = vadd.f32 %v2305_v42, %v2288_v7 }
 0x8d0   : > { %v2313_v41 = vmax.f32 %v2309_v11, 0.0 }
 0x8d1   : > { %v2314_v44 = vmax.f32 %v2310_v47, 0.0 }
 0x8d2   : > { %v2872_v45 = vpack.c.bf16 %v2313_v41, %v2311_v48 }
 0x8d3   : > { %v2870_v46 = vpack.c.bf16 %v2314_v44, %v2312_v38 }
 0x8d5   : > { %2871 = vmatprep.subr.bf16.mxu0 %v2870_v46 }
 0x8d6   : > { %2873 = vmatpush1.bf16.msra.mxu0 %v2872_v45 }
 0x8d9   : > { %2795 = vmatmul.mubr.msk.f32.vlgmr.msra.gmra.mrb[24].mxu0 %vm730_vm8, %v2315_v62 }
 0x8da   : > { %2465 = vmatprep.mubr.f32.mxu0 %v3262_v14 }
 0x8dd   : > { %2796 = vmatmul.mubr.msk.f32.gmra.mrb[26].mxu0 %vm730_vm8, %v2316_v1 }
 0x8de   : > { %2471 = vmatprep.mubr.f32.mxu0 %v3262_v14 }
 0x8e1   : > { %2797 = vmatmul.mubr.msk.f32.gmra.mrb[28].mxu0 %vm730_vm8, %v2317_v49 }
 0x8e2   : > { %2477 = vmatprep.mubr.f32.mxu0 %v3262_v14 }
 0x8e5   : > { %2798 = vmatmul.mubr.msk.f32.gmra.mrb[30].mxu0 %vm730_vm8, %v2318_v50 }
 0x8e6   : > { %2483 = vmatprep.mubr.f32.mxu0 %v3262_v14 }
 0x8e9   : > { %2799 = vmatmul.mubr.msk.f32.gmra.mrb[32].mxu0 %vm730_vm8, %v2319_v3 }
 0x8ea   : > { %2489 = vmatprep.mubr.f32.mxu0 %v3262_v14 }
 0x8ed   : > { %2800 = vmatmul.mubr.msk.f32.gmra.mrb[34].mxu0 %vm730_vm8, %v2320_v51 }
 0x8ee   : > { %2495 = vmatprep.mubr.f32.mxu0 %v3262_v14 }
 0x8f1   : > { %2801 = vmatmul.mubr.msk.f32.gmra.mrb[36].mxu0 %vm730_vm8, %v2321_v52 }
 0x8f2   : > { %2501 = vmatprep.mubr.f32.mxu0 %v3262_v14 }
 0x8f5   : > { %2802 = vmatmul.mubr.msk.f32.gmra.mrb[38].mxu0 %vm730_vm8, %v2322_v53 }
 0x9ac   : > { %v2461_v54 = vpop.f32.mrb[24].mxu0 }
 0x9ad   : > { %v2462_v55 = vadd.f32 %v2461_v54, %v2334_v5  ;;  %v2463_v56 = vpop.f32.mrb[25].mxu0 }
 0x9ae   : > { %v2464_v57 = vadd.f32 %v2463_v56, %v2334_v5 }
 0x9af   : > { %2524 = vrot.lane.b32.xlu0 %v2462_v55, %s3271_s27 }
 0x9b0   : > { %v2467_v59 = vpop.f32.mrb[26].mxu0  ;;  %2526 = vrot.lane.b32.xlu1 %v2464_v57, %s3271_s27 }
 0x9b1   : > { %v2468_v6 = vadd.f32 %v2467_v59, %v2339_v58  ;;  %v2469_v14 = vpop.f32.mrb[27].mxu0 }
 0x9b2   : > { %v2470_v60 = vadd.f32 %v2469_v14, %v2339_v58 }
 0x9b3   : > { %2528 = vrot.lane.b32.xlu0 %v2468_v6, %s3271_s27 }
 0x9b4   : > { %v2473_v61 = vpop.f32.mrb[28].mxu0  ;;  %2530 = vrot.lane.b32.xlu1 %v2470_v60, %s3271_s27 }
 0x9b5   : > { %v2474_v63 = vadd.f32 %v2473_v61, %v2344_v13  ;;  %v2475_v0 = vpop.f32.mrb[29].mxu0 }
 0x9b6   : > { %v2476_v15 = vadd.f32 %v2475_v0, %v2344_v13 }
 0x9b7   : > { %2532 = vrot.lane.b32.xlu0 %v2474_v63, %s3271_s27 }
 0x9b8   : > { %v2479_v2 = vpop.f32.mrb[30].mxu0  ;;  %2534 = vrot.lane.b32.xlu1 %v2476_v15, %s3271_s27 }
 0x9b9   : > { %v2480_v36 = vadd.f32 %v2479_v2, %v2349_v17  ;;  %v2481_v4 = vpop.f32.mrb[31].mxu0 }
 0x9ba   : > { %v2482_v8 = vadd.f32 %v2481_v4, %v2349_v17 }
 0x9bb   : > { %2536 = vrot.lane.b32.xlu0 %v2480_v36, %s3271_s27 }
 0x9bc   : > { %v2485_v10 = vpop.f32.mrb[32].mxu0  ;;  %2538 = vrot.lane.b32.xlu1 %v2482_v8, %s3271_s27 }
 0x9bd   : > { %v2486_v18 = vadd.f32 %v2485_v10, %v2354_v16  ;;  %v2487_v19 = vpop.f32.mrb[33].mxu0 }
 0x9be   : > { %v2488_v20 = vadd.f32 %v2487_v19, %v2354_v16 }
 0x9bf   : > { %2540 = vrot.lane.b32.xlu0 %v2486_v18, %s3271_s27 }
 0x9c0   : > { %v2491_v43 = vpop.f32.mrb[34].mxu0  ;;  %2542 = vrot.lane.b32.xlu1 %v2488_v20, %s3271_s27 }
 0x9c1   : > { %v2492_v22 = vadd.f32 %v2491_v43, %v2359_v21  ;;  %v2493_v24 = vpop.f32.mrb[35].mxu0 }
 0x9c2   : > { %v2494_v23 = vadd.f32 %v2493_v24, %v2359_v21 }
 0x9c3   : > { %2544 = vrot.lane.b32.xlu0 %v2492_v22, %s3271_s27 }
 0x9c4   : > { %v2497_v27 = vpop.f32.mrb[36].mxu0  ;;  %2546 = vrot.lane.b32.xlu1 %v2494_v23, %s3271_s27 }
 0x9c5   : > { %v2498_v29 = vadd.f32 %v2497_v27, %v2364_v25  ;;  %v2499_v30 = vpop.f32.mrb[37].mxu0 }
 0x9c6   : > { %v2500_v31 = vadd.f32 %v2499_v30, %v2364_v25 }
 0x9c7   : > { %2548 = vrot.lane.b32.xlu0 %v2498_v29, %s3271_s27 }
 0x9c8   : > { %v2503_v32 = vpop.f32.mrb[38].mxu0  ;;  %2550 = vrot.lane.b32.xlu1 %v2500_v31, %s3271_s27 }
 0x9c9   : > { %v2504_v12 = vadd.f32 %v2503_v32, %v2369_v28  ;;  %v2505_v34 = vpop.f32.mrb[39].mxu0 }
 0x9ca   : > { %v2506_v35 = vadd.f32 %v2505_v34, %v2369_v28 }
 0x9cb   : > { %2552 = vrot.lane.b32.xlu0 %v2504_v12, %s3271_s27 }
 0x9cc   : > { %2554 = vrot.lane.b32.xlu1 %v2506_v35, %s3271_s27  ;;  %s3179_s27 = sshll.u32 %s3272_s2, 4  ;;  %s3180_s27 = int_to_ptr.vmem [resolvable:$false] %s3179_s27 }
 0x9cd   : > { %s3181_s1 = scalar_lea.vmem %s3180_s27, 2048  ;;  %p3182_p1 = scmp.lt.s32.totalorder %s4047_s30, %s3180_s27 }
 0x9ce   : > { %p3183_p2 = scmp.lt.s32.totalorder %s3181_s1, %s3175_s25 }
 0x9d0   : > { %p3184_p3 = por %p3183_p2, %p3182_p1 }
 0x9d2   : > { %p3185_p5 = pnand %p3184_p3, %p3178_p0 }
 0xa21   : > { %v2525_v9 = vpop.permute.xlu0 %2524 }
 0xa22   : > { %v2527_v37 = vpop.permute.xlu1 %2526 }
 0xa23   : > { %v2557_v39 = vsel %vm2556_vm15, %v2525_v9, %v2527_v37 }
 0xa24   : > { %2573 = vst [vmem:[%s4025_s3] sm:$0xff] %v2557_v39 }
 0xa25   : > { %v2529_v40 = vpop.permute.xlu0 %2528 }
 0xa26   : > { %v2531_v42 = vpop.permute.xlu1 %2530 }
 0xa27   : > { %v2558_v26 = vsel %vm2556_vm15, %v2529_v40, %v2531_v42 }
 0xa28   : > { %2574 = vst [vmem:[%s4025_s3 + $0x8] sm:$0xff] %v2558_v26 }
 0xa29   : > { %v2533_v33 = vpop.permute.xlu0 %2532 }
 0xa2a   : > { %v2535_v11 = vpop.permute.xlu1 %2534 }
 0xa2b   : > { %v2559_v7 = vsel %vm2556_vm15, %v2533_v33, %v2535_v11 }
 0xa2c   : > { %2575 = vst [vmem:[%s4025_s3 + $0x10] sm:$0xff] %v2559_v7 }
 0xa2d   : > { %v2537_v47 = vpop.permute.xlu0 %2536 }
 0xa2e   : > { %v2539_v48 = vpop.permute.xlu1 %2538 }
 0xa2f   : > { %v2560_v41 = vsel %vm2556_vm15, %v2537_v47, %v2539_v48 }
 0xa30   : > { %2576 = vst [vmem:[%s4025_s3 + $0x18] sm:$0xff] %v2560_v41 }
 0xa31   : > { %v2541_v38 = vpop.permute.xlu0 %2540 }
 0xa32   : > { %v2543_v44 = vpop.permute.xlu1 %2542 }
 0xa33   : > { %v2561_v45 = vsel %vm2556_vm15, %v2541_v38, %v2543_v44 }
 0xa34   : > { %2577 = vst [vmem:[%s4025_s3 + $0x20] sm:$0xff] %v2561_v45 }
 0xa35   : > { %v2545_v46 = vpop.permute.xlu0 %2544 }
 0xa36   : > { %v2547_v62 = vpop.permute.xlu1 %2546 }
 0xa37   : > { %v2562_v1 = vsel %vm2556_vm15, %v2545_v46, %v2547_v62 }
 0xa38   : > { %2578 = vst [vmem:[%s4025_s3 + $0x28] sm:$0xff] %v2562_v1 }
 0xa39   : > { %v2549_v49 = vpop.permute.xlu0 %2548 }
 0xa3a   : > { %v2551_v50 = vpop.permute.xlu1 %2550 }
 0xa3b   : > { %v2563_v3 = vsel %vm2556_vm15, %v2549_v49, %v2551_v50 }
 0xa3c   : > { %2579 = vst [vmem:[%s4025_s3 + $0x30] sm:$0xff] %v2563_v3 }
 0xa3d   : > { %v2553_v51 = vpop.permute.xlu0 %2552 }
 0xa3e   : > { %v2555_v52 = vpop.permute.xlu1 %2554 }
 0xa3f   : > { %v2564_v53 = vsel %vm2556_vm15, %v2553_v51, %v2555_v52 }
 0xa40   : > { %2580 = vst [vmem:[%s4025_s3 + $0x38] sm:$0xff] %v2564_v53 }
 0xa41   : > { %3188 = shalt.err (!%p3185_p5)
}
 0xa42   : > { %s3189_s28 = scalar_lea.hbm %s4045_s17, 1024  ;;  %s3193_s19 = scalar_lea.hbm %s4115_s16, 2048 }
 0xa43   : > { %p3190_p6 = scmp.ne.s32.totalorder %s4045_s17, %s3189_s28  ;;  %p3194_p10 = scmp.lt.u32.totalorder %s4045_s17, %s4115_s16 }
 0xa44   : > { %p3195_p11 = scmp.lt.u32.totalorder %s3193_s19, %s3189_s28  ;;  %p3197_p13 = scmp.lt.u32.totalorder %s3189_s28, %s4045_s17 }
 0xa45   : > { %p3191_p7 = pnand %p3190_p6, %p3400_p4 }
 0xa46   : > { %p3196_p12 = por %p3195_p11, %p3194_p10 }
 0xa47   : > { %p3192_p9 = pneg %p3191_p7 }
 0xa48   : > { %p3198_p0 = por %p3197_p13, %p3196_p12 }
 0xa4a   : > { %p3199_p1 = pnand %p3198_p0, %p3192_p9 }
 0xa4c   : > { %3202 = shalt.err (!%p3199_p1)
}
 0xa4d   : > { %s3273_s25 = smov 128   ;;  %s3274_s27 = smov 8  }
 0xa4e   : > { %2934 = dma.vmem_to_hbm [thread:$0]  (%p3400_p4), %s4047_s30, 1024, %s4045_s17, %s4053_s24, %s3273_s25, %s3273_s25, %s3274_s27  }
 0xa4f PF: > { %p2940_p2 = scmp.ge.s32.totalorder %s3253_s26, 2  ;;  %s2612_s1 = sand.u32 1, %s3233_s21  }
 0xa50   : > { %s2613_s28 = scalar_lea.sflag [#allocation3], %s2612_s1 }
 0xa51   : > { %p2937_p3 = pnand %p2940_p2, %p3407_p8 }
 0xa53   : > { %3228 = dma.done.wait (!%p2937_p3), %s2613_s28, 1024  }
 0xa54   : > { %3230 = vsyncadd (!%p2937_p3), %s2613_s28, 4294966272  ;;  %s29_s26 = sadd.s32 1, %s3253_s26   ;;  %s4141_s3 = sld [smem:[#allocation7_spill]] }
 0xa55   : > { %p26_p5 = scmp.ge.s32.totalorder %s29_s26, 4   ;;  %s4142_s24 = sld [smem:[#allocation5_spill]] }
 0xa56   : > { %s4143_s25 = sld [smem:[#allocation6_spill]]  ;;  %s4144_s21 = smov %s3237_s22 }
 0xa57   : > { %s4145_s22 = smov %s3241_s23  ;;  %28 = sbr.rel (!%p26_p5) target bundleno = 9 (0x9), region = 130 }
 0xa5a   : > { %s4146_s23 = smov %s4141_s3 }
 0xa5e   :  { %2618 = vsyncpa [#allocation3], 1 }
 0xa5f   :  { %2620 = vsyncpa [#allocation3 + $0x1], 1 }

</bundles_post_ra>
